<compile_context>
chip_gen: v7x
topology: tpu7x:2x2x1
jax: 0.10.0
libtpu: 0.0.40
codegen_flags: <defaults>
</compile_context>

<pallas_src>
import functools
import math

import jax
import jax.numpy as jnp
from jax import lax
from jax.experimental import pallas as pl
from jax.experimental.pallas import tpu as pltpu


def _encoder_kernel(T, B,
                    emb_ref,     # (T*B, 2E)  bf16  rows: [emb(t) | emb(T-1-t)]
                    wih_ref,     # (2E, 6H)   bf16  block-diag, cols [r_f r_b z_f z_b n_f n_b]
                    bx_ref,      # (1, 6H)    f32   folded bih (+ bhh for r,z)
                    whh_ref,     # (2H, 6H)   f32   block-diag hidden weights
                    bhhn_ref,    # (1, 2H)    f32   [bhh_n_f | bhh_n_b]
                    mask_ref,    # (T, B, 2H) f32   len masks: fwd@t | bwd@(T-1-t)
                    wfc_ref,     # (2H, D)    f32
                    bfc_ref,     # (1, D)     f32
                    out_ref,     # (T, B, 2H) f32   fused outputs (bwd half time-reversed)
                    hid_ref,     # (B, D)     f32
                    xp_ref):     # (T, B, 6H) f32   scratch: hoisted input projection
    H2 = bhhn_ref.shape[-1]          # 2*H
    H4 = 2 * H2                      # 4*H

    # ---- Hoisted bf16 input projection for BOTH directions (one MXU dot) ---
    proj = (jnp.dot(emb_ref[...], wih_ref[...],
                    preferred_element_type=jnp.float32)
            + bx_ref[...])                                     # (T*B, 6H) f32
    # Store slab-by-slab into the leading-indexed scratch (prologue-only,
    # static, 8-sublane aligned since B is padded to a multiple of 8), so the
    # per-step recurrence reads are whole tile-aligned xp_ref[t] slabs.
    for t in range(T):
        xp_ref[t] = proj[t * B:(t + 1) * B, :]

    whh = whh_ref[...]                                         # (2H, 6H)
    bhhn = jnp.broadcast_to(bhhn_ref[...], (B, H2))            # hoisted broadcast

    # ---- Fused fwd+bwd GRU recurrence: h = [h_f | h_b]  (B, 2H) ------------
    # PyTorch GRU cell, gate order (r, z, n); both directions advance in
    # lock-step (fwd consumes time t, bwd consumes time T-1-t).
    def step(t, h):
        xg = xp_ref[t]                                         # (B, 6H)
        hh = jnp.dot(h, whh, preferred_element_type=jnp.float32)   # (B, 6H)
        rz = jax.nn.sigmoid(xg[:, :H4] + hh[:, :H4])           # (B, 4H)
        r = rz[:, :H2]
        z = rz[:, H2:]
        n = jnp.tanh(xg[:, H4:] + r * (hh[:, H4:] + bhhn))
        h_new = (1.0 - z) * n + z * h
        m = mask_ref[t]                                        # (B, 2H)
        o = m * h_new                                          # exact 0 when padded
        out_ref[t] = o                                         # single lane-dense store
        return o + (1.0 - m) * h                               # freeze past length

    h0 = jnp.zeros((B, H2), jnp.float32)
    h_fin = lax.fori_loop(0, T, step, h0,
                          unroll=(True if T <= 8 else 4))

    # ---- hidden = tanh([h_f | h_b] @ Wfc + bfc)  (single fused dot) --------
    hid_ref[...] = jnp.tanh(
        jnp.dot(h_fin, wfc_ref[...], preferred_element_type=jnp.float32)
        + bfc_ref[...])


def make_params(key, input_dim, emb_dim, enc_hid_dim, dec_hid_dim):
    """Deterministic synthetic parameters, PyTorch-style per-gate layout."""
    ks = jax.random.split(key, 12)
    s = 0.1
    H, E, D = enc_hid_dim, emb_dim, dec_hid_dim
    return dict(
        embedding=jax.random.normal(ks[0], (input_dim, E), jnp.float32) * s,
        # forward direction, gate order (r, z, n)
        wih_f=jax.random.normal(ks[1], (3, E, H), jnp.float32) * s,
        whh_f=jax.random.normal(ks[2], (3, H, H), jnp.float32) * s,
        bih_f=jax.random.normal(ks[3], (3, 1, H), jnp.float32) * s,
        bhh_f=jax.random.normal(ks[4], (3, 1, H), jnp.float32) * s,
        # backward direction
        wih_b=jax.random.normal(ks[5], (3, E, H), jnp.float32) * s,
        whh_b=jax.random.normal(ks[6], (3, H, H), jnp.float32) * s,
        bih_b=jax.random.normal(ks[7], (3, 1, H), jnp.float32) * s,
        bhh_b=jax.random.normal(ks[8], (3, 1, H), jnp.float32) * s,
        # fc: torch (dec_hid, 2H) split into fwd/bwd halves, transposed
        wfc_f=jax.random.normal(ks[9], (H, D), jnp.float32) * s,
        wfc_b=jax.random.normal(ks[10], (H, D), jnp.float32) * s,
        bfc=jax.random.normal(ks[11], (1, D), jnp.float32) * s,
    )


def encoder_forward(src, src_len, params):
    """src: [T, B] int32; src_len: [B] int32 (sorted descending)."""
    T, B = src.shape
    E = params["embedding"].shape[1]
    H = params["whh_f"].shape[1]
    D = params["wfc_f"].shape[1]
    B_pad = max(8, ((B + 7) // 8) * 8)        # 8-sublane aligned batch

    # ---- glue: embedding gather + (eval-mode) dropout identity + padding ---
    embedded = jnp.take(params["embedding"], src, axis=0)       # (T, B, E) f32
    emb_p = jnp.pad(embedded, ((0, 0), (0, B_pad - B), (0, 0)))
    lens_p = jnp.pad(src_len.astype(jnp.int32), (0, B_pad - B))

    # pair fwd input at t with time-reversed bwd input -> (T, Bp, 2E), bf16
    emb_pair = jnp.concatenate([emb_p, emb_p[::-1]], axis=-1)
    emb2d = emb_pair.reshape(T * B_pad, 2 * E).astype(jnp.bfloat16)

    # ---- one-time weight repacking: block-diagonal fused fwd/bwd layout ----
    # column order: [r_f r_b | z_f z_b | n_f n_b]
    zE = jnp.zeros((E, H), jnp.float32)
    zH = jnp.zeros((H, H), jnp.float32)
    wih_bd = jnp.concatenate([
        jnp.concatenate([params["wih_f"][0], zE, params["wih_f"][1], zE,
                         params["wih_f"][2], zE], axis=1),
        jnp.concatenate([zE, params["wih_b"][0], zE, params["wih_b"][1],
                         zE, params["wih_b"][2]], axis=1),
    ], axis=0).astype(jnp.bfloat16)                              # (2E, 6H)
    whh_bd = jnp.concatenate([
        jnp.concatenate([params["whh_f"][0], zH, params["whh_f"][1], zH,
                         params["whh_f"][2], zH], axis=1),
        jnp.concatenate([zH, params["whh_b"][0], zH, params["whh_b"][1],
                         zH, params["whh_b"][2]], axis=1),
    ], axis=0)                                                   # (2H, 6H) f32
    bx = jnp.concatenate([
        params["bih_f"][0] + params["bhh_f"][0],
        params["bih_b"][0] + params["bhh_b"][0],
        params["bih_f"][1] + params["bhh_f"][1],
        params["bih_b"][1] + params["bhh_b"][1],
        params["bih_f"][2],
        params["bih_b"][2],
    ], axis=-1)                                                  # (1, 6H)
    bhhn = jnp.concatenate([params["bhh_f"][2], params["bhh_b"][2]], axis=-1)
    wfc = jnp.concatenate([params["wfc_f"], params["wfc_b"]], axis=0)  # (2H,D)

    # ---- length masks precomputed once (fwd half @ t, bwd half @ T-1-t) ----
    t_idx = jnp.arange(T)[:, None, None]                         # (T,1,1)
    lvec = lens_p[None, :, None]                                 # (1,Bp,1)
    m_f = jnp.broadcast_to(lvec > t_idx, (T, B_pad, H))
    m_b = jnp.broadcast_to(lvec > (T - 1 - t_idx), (T, B_pad, H))
    mask = jnp.concatenate([m_f, m_b], axis=-1).astype(jnp.float32)

    # ---- explicit VMEM budget (whole-array-resident design) ----------------
    def nbytes(shape, dt):
        return math.prod(shape) * jnp.dtype(dt).itemsize
    est = (nbytes((T * B_pad, 2 * E), jnp.bfloat16)
           + nbytes((2 * E, 6 * H), jnp.bfloat16)
           + nbytes((2 * H, 6 * H), jnp.float32)
           + 2 * nbytes((T, B_pad, 2 * H), jnp.float32)          # mask + out
           + nbytes((T, B_pad, 6 * H), jnp.float32)              # xp scratch
           + nbytes((2 * H, D), jnp.float32)
           + nbytes((B_pad, D), jnp.float32)
           + (1 << 16))
    vmem_limit = int(min(96 << 20, max(16 << 20, 2 * est + (4 << 20))))

    vmem = pl.BlockSpec(memory_space=pltpu.MemorySpace.VMEM)
    out_fused, hid = pl.pallas_call(
        functools.partial(_encoder_kernel, T, B_pad),
        out_shape=(
            jax.ShapeDtypeStruct((T, B_pad, 2 * H), jnp.float32),
            jax.ShapeDtypeStruct((B_pad, D), jnp.float32),
        ),
        in_specs=[vmem] * 8,
        out_specs=(vmem, vmem),
        scratch_shapes=[pltpu.VMEM((T, B_pad, 6 * H), jnp.float32)],
        compiler_params=pltpu.CompilerParams(vmem_limit_bytes=vmem_limit),
    )(emb2d, wih_bd, bx, whh_bd, bhhn, mask, wfc, params["bfc"])

    # un-fuse in the wrapper: bwd half was produced in reversed time order
    outputs = jnp.concatenate(
        [out_fused[:, :B, :H], out_fused[::-1, :B, H:]], axis=-1)  # (T, B, 2H)
    return outputs, hid[:B]


def encoder_reference(src, src_len, params):
    """Pure-JAX reference mirroring the PyTorch module (for checking)."""
    T, B = src.shape
    H = params["whh_f"].shape[1]
    hi = lax.Precision.HIGHEST
    emb = jnp.take(params["embedding"], src, axis=0)
    lens = src_len.astype(jnp.int32)

    def cell(x_t, h, wih, whh, bih, bhh):
        r = jax.nn.sigmoid(jnp.dot(x_t, wih[0], precision=hi) + bih[0]
                           + jnp.dot(h, whh[0], precision=hi) + bhh[0])
        z = jax.nn.sigmoid(jnp.dot(x_t, wih[1], precision=hi) + bih[1]
                           + jnp.dot(h, whh[1], precision=hi) + bhh[1])
        n = jnp.tanh(jnp.dot(x_t, wih[2], precision=hi) + bih[2]
                     + r * (jnp.dot(h, whh[2], precision=hi) + bhh[2]))
        return (1.0 - z) * n + z * h

    out = jnp.zeros((T, B, 2 * H), jnp.float32)
    h_f = jnp.zeros((B, H), jnp.float32)
    for t in range(T):
        m = (lens > t).astype(jnp.float32)[:, None]
        h_new = cell(emb[t], h_f, params["wih_f"], params["whh_f"],
                     params["bih_f"], params["bhh_f"])
        out = out.at[t, :, :H].set(m * h_new)
        h_f = m * h_new + (1.0 - m) * h_f
    h_b = jnp.zeros((B, H), jnp.float32)
    for i in range(T):
        t = T - 1 - i
        m = (lens > t).astype(jnp.float32)[:, None]
        h_new = cell(emb[t], h_b, params["wih_b"], params["whh_b"],
                     params["bih_b"], params["bhh_b"])
        out = out.at[t, :, H:].set(m * h_new)
        h_b = m * h_new + (1.0 - m) * h_b
    hidden = jnp.tanh(
        jnp.dot(h_f, params["wfc_f"], precision=hi)
        + jnp.dot(h_b, params["wfc_b"], precision=hi) + params["bfc"])
    return out, hidden


if __name__ == "__main__":
    INPUT_DIM = 50     # vocab size
    EMB_DIM = 32
    ENC_HID_DIM = 32
    DEC_HID_DIM = 32
    T, B = 8, 4

    key = jax.random.PRNGKey(0)
    kp, ks = jax.random.split(key)
    params = make_params(kp, INPUT_DIM, EMB_DIM, ENC_HID_DIM, DEC_HID_DIM)

    src = jax.random.randint(ks, (T, B), 0, INPUT_DIM, dtype=jnp.int32)
    src_len = jnp.array([8, 6, 5, 3], dtype=jnp.int32)   # sorted desc (pack_padded_sequence)

    outputs, hidden = encoder_forward(src, src_len, params)
    jax.block_until_ready((outputs, hidden))

    assert outputs.shape == (T, B, 2 * ENC_HID_DIM)
    assert hidden.shape == (B, DEC_HID_DIM)

    # pad_packed_sequence semantics: every padded position must be exactly zero.
    t_idx = jnp.arange(T)[:, None]                       # (T, 1)
    pad_mask = (t_idx >= src_len[None, :])[..., None]    # (T, B, 1)
    assert float(jnp.abs(jnp.where(pad_mask, outputs, 0.0)).max()) == 0.0

    # numerical check against the pure-JAX reference (f32, HIGHEST precision).
    # Tolerance loosened slightly because the hoisted input projection uses
    # bf16 MXU inputs (accumulation stays f32).
    ref_out, ref_hid = encoder_reference(src, src_len, params)
    assert bool(jnp.allclose(outputs, ref_out, atol=1e-2, rtol=1e-2))
    assert bool(jnp.allclose(hidden, ref_hid, atol=1e-2, rtol=1e-2))

    print("KERNEL_OK")
</pallas_src>

<mosaic_0001>
module attributes {stable_mosaic.version = 11 : i64} {
  func.func @_encoder_kernel(%arg0: memref<64x64xbf16, #tpu.memory_space<vmem>>, %arg1: memref<64x192xbf16, #tpu.memory_space<vmem>>, %arg2: memref<1x192xf32, #tpu.memory_space<vmem>>, %arg3: memref<64x192xf32, #tpu.memory_space<vmem>>, %arg4: memref<1x64xf32, #tpu.memory_space<vmem>>, %arg5: memref<8x8x64xf32, #tpu.memory_space<vmem>>, %arg6: memref<64x32xf32, #tpu.memory_space<vmem>>, %arg7: memref<1x32xf32, #tpu.memory_space<vmem>>, %arg8: memref<8x8x64xf32, #tpu.memory_space<vmem>>, %arg9: memref<8x32xf32, #tpu.memory_space<vmem>>, %arg10: memref<8x8x192xf32, #tpu.memory_space<vmem>>) attributes {dimension_semantics = [], scalar_prefetch = 0 : i64, scratch_operands = 1 : i64, tpu.core_type = #tpu.core_type<tc>} {
    %c0 = arith.constant 0 : index
    %c0_0 = arith.constant 0 : index
    %0 = vector.load %arg0[%c0, %c0_0] : memref<64x64xbf16, #tpu.memory_space<vmem>>, vector<64x64xbf16>
    %c0_1 = arith.constant 0 : index
    %c0_2 = arith.constant 0 : index
    %1 = vector.load %arg1[%c0_1, %c0_2] : memref<64x192xbf16, #tpu.memory_space<vmem>>, vector<64x192xbf16>
    %cst = arith.constant dense<0.000000e+00> : vector<64x192xf32>
    %2 = tpu.matmul %0, %1, %cst {dimension_numbers = #tpu.dot_dimension_numbers<[1], [0], [0], [1], [0, 0, 1, 1], [], []>} : vector<64x64xbf16>, vector<64x192xbf16>, vector<64x192xf32> -> vector<64x192xf32>
    %c0_3 = arith.constant 0 : index
    %c0_4 = arith.constant 0 : index
    %3 = vector.load %arg2[%c0_3, %c0_4] : memref<1x192xf32, #tpu.memory_space<vmem>>, vector<1x192xf32>
    %4 = vector.broadcast %3 : vector<1x192xf32> to vector<64x192xf32>
    %5 = arith.addf %2, %4 : vector<64x192xf32>
    %6 = vector.extract_strided_slice %5 {offsets = [0, 0], sizes = [8, 192], strides = [1, 1]} : vector<64x192xf32> to vector<8x192xf32>
    %c0_5 = arith.constant 0 : index
    %c0_6 = arith.constant 0 : index
    %c0_7 = arith.constant 0 : index
    %7 = vector.load %arg10[%c0_5, %c0_6, %c0_7] : memref<8x8x192xf32, #tpu.memory_space<vmem>>, vector<1x8x192xf32>
    %8 = vector.shape_cast %7 : vector<1x8x192xf32> to vector<8x192xf32>
    %9 = vector.shape_cast %6 : vector<8x192xf32> to vector<1x8x192xf32>
    tpu.vector_store %arg10[%c0_5, %c0_6, %c0_7], %9 {strides = array<i32>} : memref<8x8x192xf32, #tpu.memory_space<vmem>>, vector<1x8x192xf32>,
    %10 = vector.extract_strided_slice %5 {offsets = [8, 0], sizes = [8, 192], strides = [1, 1]} : vector<64x192xf32> to vector<8x192xf32>
    %c1 = arith.constant 1 : index
    %c0_8 = arith.constant 0 : index
    %c0_9 = arith.constant 0 : index
    %11 = vector.load %arg10[%c1, %c0_8, %c0_9] : memref<8x8x192xf32, #tpu.memory_space<vmem>>, vector<1x8x192xf32>
    %12 = vector.shape_cast %11 : vector<1x8x192xf32> to vector<8x192xf32>
    %13 = vector.shape_cast %10 : vector<8x192xf32> to vector<1x8x192xf32>
    tpu.vector_store %arg10[%c1, %c0_8, %c0_9], %13 {strides = array<i32>} : memref<8x8x192xf32, #tpu.memory_space<vmem>>, vector<1x8x192xf32>,
    %14 = vector.extract_strided_slice %5 {offsets = [16, 0], sizes = [8, 192], strides = [1, 1]} : vector<64x192xf32> to vector<8x192xf32>
    %c2 = arith.constant 2 : index
    %c0_10 = arith.constant 0 : index
    %c0_11 = arith.constant 0 : index
    %15 = vector.load %arg10[%c2, %c0_10, %c0_11] : memref<8x8x192xf32, #tpu.memory_space<vmem>>, vector<1x8x192xf32>
    %16 = vector.shape_cast %15 : vector<1x8x192xf32> to vector<8x192xf32>
    %17 = vector.shape_cast %14 : vector<8x192xf32> to vector<1x8x192xf32>
    tpu.vector_store %arg10[%c2, %c0_10, %c0_11], %17 {strides = array<i32>} : memref<8x8x192xf32, #tpu.memory_space<vmem>>, vector<1x8x192xf32>,
    %18 = vector.extract_strided_slice %5 {offsets = [24, 0], sizes = [8, 192], strides = [1, 1]} : vector<64x192xf32> to vector<8x192xf32>
    %c3 = arith.constant 3 : index
    %c0_12 = arith.constant 0 : index
    %c0_13 = arith.constant 0 : index
    %19 = vector.load %arg10[%c3, %c0_12, %c0_13] : memref<8x8x192xf32, #tpu.memory_space<vmem>>, vector<1x8x192xf32>
    %20 = vector.shape_cast %19 : vector<1x8x192xf32> to vector<8x192xf32>
    %21 = vector.shape_cast %18 : vector<8x192xf32> to vector<1x8x192xf32>
    tpu.vector_store %arg10[%c3, %c0_12, %c0_13], %21 {strides = array<i32>} : memref<8x8x192xf32, #tpu.memory_space<vmem>>, vector<1x8x192xf32>,
    %22 = vector.extract_strided_slice %5 {offsets = [32, 0], sizes = [8, 192], strides = [1, 1]} : vector<64x192xf32> to vector<8x192xf32>
    %c4 = arith.constant 4 : index
    %c0_14 = arith.constant 0 : index
    %c0_15 = arith.constant 0 : index
    %23 = vector.load %arg10[%c4, %c0_14, %c0_15] : memref<8x8x192xf32, #tpu.memory_space<vmem>>, vector<1x8x192xf32>
    %24 = vector.shape_cast %23 : vector<1x8x192xf32> to vector<8x192xf32>
    %25 = vector.shape_cast %22 : vector<8x192xf32> to vector<1x8x192xf32>
    tpu.vector_store %arg10[%c4, %c0_14, %c0_15], %25 {strides = array<i32>} : memref<8x8x192xf32, #tpu.memory_space<vmem>>, vector<1x8x192xf32>,
    %26 = vector.extract_strided_slice %5 {offsets = [40, 0], sizes = [8, 192], strides = [1, 1]} : vector<64x192xf32> to vector<8x192xf32>
    %c5 = arith.constant 5 : index
    %c0_16 = arith.constant 0 : index
    %c0_17 = arith.constant 0 : index
    %27 = vector.load %arg10[%c5, %c0_16, %c0_17] : memref<8x8x192xf32, #tpu.memory_space<vmem>>, vector<1x8x192xf32>
    %28 = vector.shape_cast %27 : vector<1x8x192xf32> to vector<8x192xf32>
    %29 = vector.shape_cast %26 : vector<8x192xf32> to vector<1x8x192xf32>
    tpu.vector_store %arg10[%c5, %c0_16, %c0_17], %29 {strides = array<i32>} : memref<8x8x192xf32, #tpu.memory_space<vmem>>, vector<1x8x192xf32>,
    %30 = vector.extract_strided_slice %5 {offsets = [48, 0], sizes = [8, 192], strides = [1, 1]} : vector<64x192xf32> to vector<8x192xf32>
    %c6 = arith.constant 6 : index
    %c0_18 = arith.constant 0 : index
    %c0_19 = arith.constant 0 : index
    %31 = vector.load %arg10[%c6, %c0_18, %c0_19] : memref<8x8x192xf32, #tpu.memory_space<vmem>>, vector<1x8x192xf32>
    %32 = vector.shape_cast %31 : vector<1x8x192xf32> to vector<8x192xf32>
    %33 = vector.shape_cast %30 : vector<8x192xf32> to vector<1x8x192xf32>
    tpu.vector_store %arg10[%c6, %c0_18, %c0_19], %33 {strides = array<i32>} : memref<8x8x192xf32, #tpu.memory_space<vmem>>, vector<1x8x192xf32>,
    %34 = vector.extract_strided_slice %5 {offsets = [56, 0], sizes = [8, 192], strides = [1, 1]} : vector<64x192xf32> to vector<8x192xf32>
    %c7 = arith.constant 7 : index
    %c0_20 = arith.constant 0 : index
    %c0_21 = arith.constant 0 : index
    %35 = vector.load %arg10[%c7, %c0_20, %c0_21] : memref<8x8x192xf32, #tpu.memory_space<vmem>>, vector<1x8x192xf32>
    %36 = vector.shape_cast %35 : vector<1x8x192xf32> to vector<8x192xf32>
    %37 = vector.shape_cast %34 : vector<8x192xf32> to vector<1x8x192xf32>
    tpu.vector_store %arg10[%c7, %c0_20, %c0_21], %37 {strides = array<i32>} : memref<8x8x192xf32, #tpu.memory_space<vmem>>, vector<1x8x192xf32>,
    %c0_22 = arith.constant 0 : index
    %c0_23 = arith.constant 0 : index
    %38 = vector.load %arg3[%c0_22, %c0_23] : memref<64x192xf32, #tpu.memory_space<vmem>>, vector<64x192xf32>
    %c0_24 = arith.constant 0 : index
    %c0_25 = arith.constant 0 : index
    %39 = vector.load %arg4[%c0_24, %c0_25] : memref<1x64xf32, #tpu.memory_space<vmem>>, vector<1x64xf32>
    %40 = vector.shape_cast %39 : vector<1x64xf32> to vector<1x64xf32>
    %41 = vector.broadcast %40 : vector<1x64xf32> to vector<8x64xf32>
    %cst_26 = arith.constant 0.000000e+00 : f32
    %42 = vector.broadcast %cst_26 : f32 to vector<8x64xf32>
    %c0_i32 = arith.constant 0 : i32
    %43 = arith.index_cast %c0_i32 : i32 to index
    %c0_27 = arith.constant 0 : index
    %c0_28 = arith.constant 0 : index
    %44 = vector.load %arg10[%43, %c0_27, %c0_28] : memref<8x8x192xf32, #tpu.memory_space<vmem>>, vector<1x8x192xf32>
    %45 = vector.shape_cast %44 : vector<1x8x192xf32> to vector<8x192xf32>
    %cst_29 = arith.constant dense<0.000000e+00> : vector<8x192xf32>
    %46 = tpu.matmul %42, %38, %cst_29 {dimension_numbers = #tpu.dot_dimension_numbers<[1], [0], [0], [1], [0, 0, 1, 1], [], []>} : vector<8x64xf32>, vector<64x192xf32>, vector<8x192xf32> -> vector<8x192xf32>
    %47 = vector.extract_strided_slice %45 {offsets = [0, 0], sizes = [8, 128], strides = [1, 1]} : vector<8x192xf32> to vector<8x128xf32>
    %48 = vector.extract_strided_slice %46 {offsets = [0, 0], sizes = [8, 128], strides = [1, 1]} : vector<8x192xf32> to vector<8x128xf32>
    %49 = arith.addf %47, %48 : vector<8x128xf32>
    %50 = arith.negf %49 : vector<8x128xf32>
    %51 = math.exp %50 : vector<8x128xf32>
    %cst_30 = arith.constant 1.000000e+00 : f32
    %52 = vector.broadcast %cst_30 : f32 to vector<8x128xf32>
    %53 = arith.addf %52, %51 : vector<8x128xf32>
    %54 = arith.divf %52, %53 : vector<8x128xf32>
    %55 = vector.extract_strided_slice %54 {offsets = [0, 0], sizes = [8, 64], strides = [1, 1]} : vector<8x128xf32> to vector<8x64xf32>
    %56 = vector.extract_strided_slice %54 {offsets = [0, 64], sizes = [8, 64], strides = [1, 1]} : vector<8x128xf32> to vector<8x64xf32>
    %57 = vector.extract_strided_slice %45 {offsets = [0, 128], sizes = [8, 64], strides = [1, 1]} : vector<8x192xf32> to vector<8x64xf32>
    %58 = vector.extract_strided_slice %46 {offsets = [0, 128], sizes = [8, 64], strides = [1, 1]} : vector<8x192xf32> to vector<8x64xf32>
    %59 = arith.addf %58, %41 : vector<8x64xf32>
    %60 = arith.mulf %55, %59 : vector<8x64xf32>
    %61 = arith.addf %57, %60 : vector<8x64xf32>
    %62 = math.tanh %61 : vector<8x64xf32>
    %cst_31 = arith.constant 1.000000e+00 : f32
    %63 = vector.broadcast %cst_31 : f32 to vector<8x64xf32>
    %64 = arith.subf %63, %56 : vector<8x64xf32>
    %65 = arith.mulf %64, %62 : vector<8x64xf32>
    %66 = arith.mulf %56, %42 : vector<8x64xf32>
    %67 = arith.addf %65, %66 : vector<8x64xf32>
    %68 = arith.index_cast %c0_i32 : i32 to index
    %c0_32 = arith.constant 0 : index
    %c0_33 = arith.constant 0 : index
    %69 = vector.load %arg5[%68, %c0_32, %c0_33] : memref<8x8x64xf32, #tpu.memory_space<vmem>>, vector<1x8x64xf32>
    %70 = vector.shape_cast %69 : vector<1x8x64xf32> to vector<8x64xf32>
    %71 = arith.mulf %70, %67 : vector<8x64xf32>
    %72 = arith.index_cast %c0_i32 : i32 to index
    %c0_34 = arith.constant 0 : index
    %c0_35 = arith.constant 0 : index
    %73 = vector.load %arg8[%72, %c0_34, %c0_35] : memref<8x8x64xf32, #tpu.memory_space<vmem>>, vector<1x8x64xf32>
    %74 = vector.shape_cast %73 : vector<1x8x64xf32> to vector<8x64xf32>
    %75 = vector.shape_cast %71 : vector<8x64xf32> to vector<1x8x64xf32>
    tpu.vector_store %arg8[%72, %c0_34, %c0_35], %75 {strides = array<i32>} : memref<8x8x64xf32, #tpu.memory_space<vmem>>, vector<1x8x64xf32>,
    %cst_36 = arith.constant 1.000000e+00 : f32
    %76 = vector.broadcast %cst_36 : f32 to vector<8x64xf32>
    %77 = arith.subf %76, %70 : vector<8x64xf32>
    %78 = arith.mulf %77, %42 : vector<8x64xf32>
    %79 = arith.addf %71, %78 : vector<8x64xf32>
    %c1_i32 = arith.constant 1 : i32
    %80 = arith.index_cast %c1_i32 : i32 to index
    %c0_37 = arith.constant 0 : index
    %c0_38 = arith.constant 0 : index
    %81 = vector.load %arg10[%80, %c0_37, %c0_38] : memref<8x8x192xf32, #tpu.memory_space<vmem>>, vector<1x8x192xf32>
    %82 = vector.shape_cast %81 : vector<1x8x192xf32> to vector<8x192xf32>
    %cst_39 = arith.constant dense<0.000000e+00> : vector<8x192xf32>
    %83 = tpu.matmul %79, %38, %cst_39 {dimension_numbers = #tpu.dot_dimension_numbers<[1], [0], [0], [1], [0, 0, 1, 1], [], []>} : vector<8x64xf32>, vector<64x192xf32>, vector<8x192xf32> -> vector<8x192xf32>
    %84 = vector.extract_strided_slice %82 {offsets = [0, 0], sizes = [8, 128], strides = [1, 1]} : vector<8x192xf32> to vector<8x128xf32>
    %85 = vector.extract_strided_slice %83 {offsets = [0, 0], sizes = [8, 128], strides = [1, 1]} : vector<8x192xf32> to vector<8x128xf32>
    %86 = arith.addf %84, %85 : vector<8x128xf32>
    %87 = arith.negf %86 : vector<8x128xf32>
    %88 = math.exp %87 : vector<8x128xf32>
    %cst_40 = arith.constant 1.000000e+00 : f32
    %89 = vector.broadcast %cst_40 : f32 to vector<8x128xf32>
    %90 = arith.addf %89, %88 : vector<8x128xf32>
    %91 = arith.divf %89, %90 : vector<8x128xf32>
    %92 = vector.extract_strided_slice %91 {offsets = [0, 0], sizes = [8, 64], strides = [1, 1]} : vector<8x128xf32> to vector<8x64xf32>
    %93 = vector.extract_strided_slice %91 {offsets = [0, 64], sizes = [8, 64], strides = [1, 1]} : vector<8x128xf32> to vector<8x64xf32>
    %94 = vector.extract_strided_slice %82 {offsets = [0, 128], sizes = [8, 64], strides = [1, 1]} : vector<8x192xf32> to vector<8x64xf32>
    %95 = vector.extract_strided_slice %83 {offsets = [0, 128], sizes = [8, 64], strides = [1, 1]} : vector<8x192xf32> to vector<8x64xf32>
    %96 = arith.addf %95, %41 : vector<8x64xf32>
    %97 = arith.mulf %92, %96 : vector<8x64xf32>
    %98 = arith.addf %94, %97 : vector<8x64xf32>
    %99 = math.tanh %98 : vector<8x64xf32>
    %cst_41 = arith.constant 1.000000e+00 : f32
    %100 = vector.broadcast %cst_41 : f32 to vector<8x64xf32>
    %101 = arith.subf %100, %93 : vector<8x64xf32>
    %102 = arith.mulf %101, %99 : vector<8x64xf32>
    %103 = arith.mulf %93, %79 : vector<8x64xf32>
    %104 = arith.addf %102, %103 : vector<8x64xf32>
    %105 = arith.index_cast %c1_i32 : i32 to index
    %c0_42 = arith.constant 0 : index
    %c0_43 = arith.constant 0 : index
    %106 = vector.load %arg5[%105, %c0_42, %c0_43] : memref<8x8x64xf32, #tpu.memory_space<vmem>>, vector<1x8x64xf32>
    %107 = vector.shape_cast %106 : vector<1x8x64xf32> to vector<8x64xf32>
    %108 = arith.mulf %107, %104 : vector<8x64xf32>
    %109 = arith.index_cast %c1_i32 : i32 to index
    %c0_44 = arith.constant 0 : index
    %c0_45 = arith.constant 0 : index
    %110 = vector.load %arg8[%109, %c0_44, %c0_45] : memref<8x8x64xf32, #tpu.memory_space<vmem>>, vector<1x8x64xf32>
    %111 = vector.shape_cast %110 : vector<1x8x64xf32> to vector<8x64xf32>
    %112 = vector.shape_cast %108 : vector<8x64xf32> to vector<1x8x64xf32>
    tpu.vector_store %arg8[%109, %c0_44, %c0_45], %112 {strides = array<i32>} : memref<8x8x64xf32, #tpu.memory_space<vmem>>, vector<1x8x64xf32>,
    %cst_46 = arith.constant 1.000000e+00 : f32
    %113 = vector.broadcast %cst_46 : f32 to vector<8x64xf32>
    %114 = arith.subf %113, %107 : vector<8x64xf32>
    %115 = arith.mulf %114, %79 : vector<8x64xf32>
    %116 = arith.addf %108, %115 : vector<8x64xf32>
    %c2_i32 = arith.constant 2 : i32
    %117 = arith.index_cast %c2_i32 : i32 to index
    %c0_47 = arith.constant 0 : index
    %c0_48 = arith.constant 0 : index
    %118 = vector.load %arg10[%117, %c0_47, %c0_48] : memref<8x8x192xf32, #tpu.memory_space<vmem>>, vector<1x8x192xf32>
    %119 = vector.shape_cast %118 : vector<1x8x192xf32> to vector<8x192xf32>
    %cst_49 = arith.constant dense<0.000000e+00> : vector<8x192xf32>
    %120 = tpu.matmul %116, %38, %cst_49 {dimension_numbers = #tpu.dot_dimension_numbers<[1], [0], [0], [1], [0, 0, 1, 1], [], []>} : vector<8x64xf32>, vector<64x192xf32>, vector<8x192xf32> -> vector<8x192xf32>
    %121 = vector.extract_strided_slice %119 {offsets = [0, 0], sizes = [8, 128], strides = [1, 1]} : vector<8x192xf32> to vector<8x128xf32>
    %122 = vector.extract_strided_slice %120 {offsets = [0, 0], sizes = [8, 128], strides = [1, 1]} : vector<8x192xf32> to vector<8x128xf32>
    %123 = arith.addf %121, %122 : vector<8x128xf32>
    %124 = arith.negf %123 : vector<8x128xf32>
    %125 = math.exp %124 : vector<8x128xf32>
    %cst_50 = arith.constant 1.000000e+00 : f32
    %126 = vector.broadcast %cst_50 : f32 to vector<8x128xf32>
    %127 = arith.addf %126, %125 : vector<8x128xf32>
    %128 = arith.divf %126, %127 : vector<8x128xf32>
    %129 = vector.extract_strided_slice %128 {offsets = [0, 0], sizes = [8, 64], strides = [1, 1]} : vector<8x128xf32> to vector<8x64xf32>
    %130 = vector.extract_strided_slice %128 {offsets = [0, 64], sizes = [8, 64], strides = [1, 1]} : vector<8x128xf32> to vector<8x64xf32>
    %131 = vector.extract_strided_slice %119 {offsets = [0, 128], sizes = [8, 64], strides = [1, 1]} : vector<8x192xf32> to vector<8x64xf32>
    %132 = vector.extract_strided_slice %120 {offsets = [0, 128], sizes = [8, 64], strides = [1, 1]} : vector<8x192xf32> to vector<8x64xf32>
    %133 = arith.addf %132, %41 : vector<8x64xf32>
    %134 = arith.mulf %129, %133 : vector<8x64xf32>
    %135 = arith.addf %131, %134 : vector<8x64xf32>
    %136 = math.tanh %135 : vector<8x64xf32>
    %cst_51 = arith.constant 1.000000e+00 : f32
    %137 = vector.broadcast %cst_51 : f32 to vector<8x64xf32>
    %138 = arith.subf %137, %130 : vector<8x64xf32>
    %139 = arith.mulf %138, %136 : vector<8x64xf32>
    %140 = arith.mulf %130, %116 : vector<8x64xf32>
    %141 = arith.addf %139, %140 : vector<8x64xf32>
    %142 = arith.index_cast %c2_i32 : i32 to index
    %c0_52 = arith.constant 0 : index
    %c0_53 = arith.constant 0 : index
    %143 = vector.load %arg5[%142, %c0_52, %c0_53] : memref<8x8x64xf32, #tpu.memory_space<vmem>>, vector<1x8x64xf32>
    %144 = vector.shape_cast %143 : vector<1x8x64xf32> to vector<8x64xf32>
    %145 = arith.mulf %144, %141 : vector<8x64xf32>
    %146 = arith.index_cast %c2_i32 : i32 to index
    %c0_54 = arith.constant 0 : index
    %c0_55 = arith.constant 0 : index
    %147 = vector.load %arg8[%146, %c0_54, %c0_55] : memref<8x8x64xf32, #tpu.memory_space<vmem>>, vector<1x8x64xf32>
    %148 = vector.shape_cast %147 : vector<1x8x64xf32> to vector<8x64xf32>
    %149 = vector.shape_cast %145 : vector<8x64xf32> to vector<1x8x64xf32>
    tpu.vector_store %arg8[%146, %c0_54, %c0_55], %149 {strides = array<i32>} : memref<8x8x64xf32, #tpu.memory_space<vmem>>, vector<1x8x64xf32>,
    %cst_56 = arith.constant 1.000000e+00 : f32
    %150 = vector.broadcast %cst_56 : f32 to vector<8x64xf32>
    %151 = arith.subf %150, %144 : vector<8x64xf32>
    %152 = arith.mulf %151, %116 : vector<8x64xf32>
    %153 = arith.addf %145, %152 : vector<8x64xf32>
    %c3_i32 = arith.constant 3 : i32
    %154 = arith.index_cast %c3_i32 : i32 to index
    %c0_57 = arith.constant 0 : index
    %c0_58 = arith.constant 0 : index
    %155 = vector.load %arg10[%154, %c0_57, %c0_58] : memref<8x8x192xf32, #tpu.memory_space<vmem>>, vector<1x8x192xf32>
    %156 = vector.shape_cast %155 : vector<1x8x192xf32> to vector<8x192xf32>
    %cst_59 = arith.constant dense<0.000000e+00> : vector<8x192xf32>
    %157 = tpu.matmul %153, %38, %cst_59 {dimension_numbers = #tpu.dot_dimension_numbers<[1], [0], [0], [1], [0, 0, 1, 1], [], []>} : vector<8x64xf32>, vector<64x192xf32>, vector<8x192xf32> -> vector<8x192xf32>
    %158 = vector.extract_strided_slice %156 {offsets = [0, 0], sizes = [8, 128], strides = [1, 1]} : vector<8x192xf32> to vector<8x128xf32>
    %159 = vector.extract_strided_slice %157 {offsets = [0, 0], sizes = [8, 128], strides = [1, 1]} : vector<8x192xf32> to vector<8x128xf32>
    %160 = arith.addf %158, %159 : vector<8x128xf32>
    %161 = arith.negf %160 : vector<8x128xf32>
    %162 = math.exp %161 : vector<8x128xf32>
    %cst_60 = arith.constant 1.000000e+00 : f32
    %163 = vector.broadcast %cst_60 : f32 to vector<8x128xf32>
    %164 = arith.addf %163, %162 : vector<8x128xf32>
    %165 = arith.divf %163, %164 : vector<8x128xf32>
    %166 = vector.extract_strided_slice %165 {offsets = [0, 0], sizes = [8, 64], strides = [1, 1]} : vector<8x128xf32> to vector<8x64xf32>
    %167 = vector.extract_strided_slice %165 {offsets = [0, 64], sizes = [8, 64], strides = [1, 1]} : vector<8x128xf32> to vector<8x64xf32>
    %168 = vector.extract_strided_slice %156 {offsets = [0, 128], sizes = [8, 64], strides = [1, 1]} : vector<8x192xf32> to vector<8x64xf32>
    %169 = vector.extract_strided_slice %157 {offsets = [0, 128], sizes = [8, 64], strides = [1, 1]} : vector<8x192xf32> to vector<8x64xf32>
    %170 = arith.addf %169, %41 : vector<8x64xf32>
    %171 = arith.mulf %166, %170 : vector<8x64xf32>
    %172 = arith.addf %168, %171 : vector<8x64xf32>
    %173 = math.tanh %172 : vector<8x64xf32>
    %cst_61 = arith.constant 1.000000e+00 : f32
    %174 = vector.broadcast %cst_61 : f32 to vector<8x64xf32>
    %175 = arith.subf %174, %167 : vector<8x64xf32>
    %176 = arith.mulf %175, %173 : vector<8x64xf32>
    %177 = arith.mulf %167, %153 : vector<8x64xf32>
    %178 = arith.addf %176, %177 : vector<8x64xf32>
    %179 = arith.index_cast %c3_i32 : i32 to index
    %c0_62 = arith.constant 0 : index
    %c0_63 = arith.constant 0 : index
    %180 = vector.load %arg5[%179, %c0_62, %c0_63] : memref<8x8x64xf32, #tpu.memory_space<vmem>>, vector<1x8x64xf32>
    %181 = vector.shape_cast %180 : vector<1x8x64xf32> to vector<8x64xf32>
    %182 = arith.mulf %181, %178 : vector<8x64xf32>
    %183 = arith.index_cast %c3_i32 : i32 to index
    %c0_64 = arith.constant 0 : index
    %c0_65 = arith.constant 0 : index
    %184 = vector.load %arg8[%183, %c0_64, %c0_65] : memref<8x8x64xf32, #tpu.memory_space<vmem>>, vector<1x8x64xf32>
    %185 = vector.shape_cast %184 : vector<1x8x64xf32> to vector<8x64xf32>
    %186 = vector.shape_cast %182 : vector<8x64xf32> to vector<1x8x64xf32>
    tpu.vector_store %arg8[%183, %c0_64, %c0_65], %186 {strides = array<i32>} : memref<8x8x64xf32, #tpu.memory_space<vmem>>, vector<1x8x64xf32>,
    %cst_66 = arith.constant 1.000000e+00 : f32
    %187 = vector.broadcast %cst_66 : f32 to vector<8x64xf32>
    %188 = arith.subf %187, %181 : vector<8x64xf32>
    %189 = arith.mulf %188, %153 : vector<8x64xf32>
    %190 = arith.addf %182, %189 : vector<8x64xf32>
    %c4_i32 = arith.constant 4 : i32
    %191 = arith.index_cast %c4_i32 : i32 to index
    %c0_67 = arith.constant 0 : index
    %c0_68 = arith.constant 0 : index
    %192 = vector.load %arg10[%191, %c0_67, %c0_68] : memref<8x8x192xf32, #tpu.memory_space<vmem>>, vector<1x8x192xf32>
    %193 = vector.shape_cast %192 : vector<1x8x192xf32> to vector<8x192xf32>
    %cst_69 = arith.constant dense<0.000000e+00> : vector<8x192xf32>
    %194 = tpu.matmul %190, %38, %cst_69 {dimension_numbers = #tpu.dot_dimension_numbers<[1], [0], [0], [1], [0, 0, 1, 1], [], []>} : vector<8x64xf32>, vector<64x192xf32>, vector<8x192xf32> -> vector<8x192xf32>
    %195 = vector.extract_strided_slice %193 {offsets = [0, 0], sizes = [8, 128], strides = [1, 1]} : vector<8x192xf32> to vector<8x128xf32>
    %196 = vector.extract_strided_slice %194 {offsets = [0, 0], sizes = [8, 128], strides = [1, 1]} : vector<8x192xf32> to vector<8x128xf32>
    %197 = arith.addf %195, %196 : vector<8x128xf32>
    %198 = arith.negf %197 : vector<8x128xf32>
    %199 = math.exp %198 : vector<8x128xf32>
    %cst_70 = arith.constant 1.000000e+00 : f32
    %200 = vector.broadcast %cst_70 : f32 to vector<8x128xf32>
    %201 = arith.addf %200, %199 : vector<8x128xf32>
    %202 = arith.divf %200, %201 : vector<8x128xf32>
    %203 = vector.extract_strided_slice %202 {offsets = [0, 0], sizes = [8, 64], strides = [1, 1]} : vector<8x128xf32> to vector<8x64xf32>
    %204 = vector.extract_strided_slice %202 {offsets = [0, 64], sizes = [8, 64], strides = [1, 1]} : vector<8x128xf32> to vector<8x64xf32>
    %205 = vector.extract_strided_slice %193 {offsets = [0, 128], sizes = [8, 64], strides = [1, 1]} : vector<8x192xf32> to vector<8x64xf32>
    %206 = vector.extract_strided_slice %194 {offsets = [0, 128], sizes = [8, 64], strides = [1, 1]} : vector<8x192xf32> to vector<8x64xf32>
    %207 = arith.addf %206, %41 : vector<8x64xf32>
    %208 = arith.mulf %203, %207 : vector<8x64xf32>
    %209 = arith.addf %205, %208 : vector<8x64xf32>
    %210 = math.tanh %209 : vector<8x64xf32>
    %cst_71 = arith.constant 1.000000e+00 : f32
    %211 = vector.broadcast %cst_71 : f32 to vector<8x64xf32>
    %212 = arith.subf %211, %204 : vector<8x64xf32>
    %213 = arith.mulf %212, %210 : vector<8x64xf32>
    %214 = arith.mulf %204, %190 : vector<8x64xf32>
    %215 = arith.addf %213, %214 : vector<8x64xf32>
    %216 = arith.index_cast %c4_i32 : i32 to index
    %c0_72 = arith.constant 0 : index
    %c0_73 = arith.constant 0 : index
    %217 = vector.load %arg5[%216, %c0_72, %c0_73] : memref<8x8x64xf32, #tpu.memory_space<vmem>>, vector<1x8x64xf32>
    %218 = vector.shape_cast %217 : vector<1x8x64xf32> to vector<8x64xf32>
    %219 = arith.mulf %218, %215 : vector<8x64xf32>
    %220 = arith.index_cast %c4_i32 : i32 to index
    %c0_74 = arith.constant 0 : index
    %c0_75 = arith.constant 0 : index
    %221 = vector.load %arg8[%220, %c0_74, %c0_75] : memref<8x8x64xf32, #tpu.memory_space<vmem>>, vector<1x8x64xf32>
    %222 = vector.shape_cast %221 : vector<1x8x64xf32> to vector<8x64xf32>
    %223 = vector.shape_cast %219 : vector<8x64xf32> to vector<1x8x64xf32>
    tpu.vector_store %arg8[%220, %c0_74, %c0_75], %223 {strides = array<i32>} : memref<8x8x64xf32, #tpu.memory_space<vmem>>, vector<1x8x64xf32>,
    %cst_76 = arith.constant 1.000000e+00 : f32
    %224 = vector.broadcast %cst_76 : f32 to vector<8x64xf32>
    %225 = arith.subf %224, %218 : vector<8x64xf32>
    %226 = arith.mulf %225, %190 : vector<8x64xf32>
    %227 = arith.addf %219, %226 : vector<8x64xf32>
    %c5_i32 = arith.constant 5 : i32
    %228 = arith.index_cast %c5_i32 : i32 to index
    %c0_77 = arith.constant 0 : index
    %c0_78 = arith.constant 0 : index
    %229 = vector.load %arg10[%228, %c0_77, %c0_78] : memref<8x8x192xf32, #tpu.memory_space<vmem>>, vector<1x8x192xf32>
    %230 = vector.shape_cast %229 : vector<1x8x192xf32> to vector<8x192xf32>
    %cst_79 = arith.constant dense<0.000000e+00> : vector<8x192xf32>
    %231 = tpu.matmul %227, %38, %cst_79 {dimension_numbers = #tpu.dot_dimension_numbers<[1], [0], [0], [1], [0, 0, 1, 1], [], []>} : vector<8x64xf32>, vector<64x192xf32>, vector<8x192xf32> -> vector<8x192xf32>
    %232 = vector.extract_strided_slice %230 {offsets = [0, 0], sizes = [8, 128], strides = [1, 1]} : vector<8x192xf32> to vector<8x128xf32>
    %233 = vector.extract_strided_slice %231 {offsets = [0, 0], sizes = [8, 128], strides = [1, 1]} : vector<8x192xf32> to vector<8x128xf32>
    %234 = arith.addf %232, %233 : vector<8x128xf32>
    %235 = arith.negf %234 : vector<8x128xf32>
    %236 = math.exp %235 : vector<8x128xf32>
    %cst_80 = arith.constant 1.000000e+00 : f32
    %237 = vector.broadcast %cst_80 : f32 to vector<8x128xf32>
    %238 = arith.addf %237, %236 : vector<8x128xf32>
    %239 = arith.divf %237, %238 : vector<8x128xf32>
    %240 = vector.extract_strided_slice %239 {offsets = [0, 0], sizes = [8, 64], strides = [1, 1]} : vector<8x128xf32> to vector<8x64xf32>
    %241 = vector.extract_strided_slice %239 {offsets = [0, 64], sizes = [8, 64], strides = [1, 1]} : vector<8x128xf32> to vector<8x64xf32>
    %242 = vector.extract_strided_slice %230 {offsets = [0, 128], sizes = [8, 64], strides = [1, 1]} : vector<8x192xf32> to vector<8x64xf32>
    %243 = vector.extract_strided_slice %231 {offsets = [0, 128], sizes = [8, 64], strides = [1, 1]} : vector<8x192xf32> to vector<8x64xf32>
    %244 = arith.addf %243, %41 : vector<8x64xf32>
    %245 = arith.mulf %240, %244 : vector<8x64xf32>
    %246 = arith.addf %242, %245 : vector<8x64xf32>
    %247 = math.tanh %246 : vector<8x64xf32>
    %cst_81 = arith.constant 1.000000e+00 : f32
    %248 = vector.broadcast %cst_81 : f32 to vector<8x64xf32>
    %249 = arith.subf %248, %241 : vector<8x64xf32>
    %250 = arith.mulf %249, %247 : vector<8x64xf32>
    %251 = arith.mulf %241, %227 : vector<8x64xf32>
    %252 = arith.addf %250, %251 : vector<8x64xf32>
    %253 = arith.index_cast %c5_i32 : i32 to index
    %c0_82 = arith.constant 0 : index
    %c0_83 = arith.constant 0 : index
    %254 = vector.load %arg5[%253, %c0_82, %c0_83] : memref<8x8x64xf32, #tpu.memory_space<vmem>>, vector<1x8x64xf32>
    %255 = vector.shape_cast %254 : vector<1x8x64xf32> to vector<8x64xf32>
    %256 = arith.mulf %255, %252 : vector<8x64xf32>
    %257 = arith.index_cast %c5_i32 : i32 to index
    %c0_84 = arith.constant 0 : index
    %c0_85 = arith.constant 0 : index
    %258 = vector.load %arg8[%257, %c0_84, %c0_85] : memref<8x8x64xf32, #tpu.memory_space<vmem>>, vector<1x8x64xf32>
    %259 = vector.shape_cast %258 : vector<1x8x64xf32> to vector<8x64xf32>
    %260 = vector.shape_cast %256 : vector<8x64xf32> to vector<1x8x64xf32>
    tpu.vector_store %arg8[%257, %c0_84, %c0_85], %260 {strides = array<i32>} : memref<8x8x64xf32, #tpu.memory_space<vmem>>, vector<1x8x64xf32>,
    %cst_86 = arith.constant 1.000000e+00 : f32
    %261 = vector.broadcast %cst_86 : f32 to vector<8x64xf32>
    %262 = arith.subf %261, %255 : vector<8x64xf32>
    %263 = arith.mulf %262, %227 : vector<8x64xf32>
    %264 = arith.addf %256, %263 : vector<8x64xf32>
    %c6_i32 = arith.constant 6 : i32
    %265 = arith.index_cast %c6_i32 : i32 to index
    %c0_87 = arith.constant 0 : index
    %c0_88 = arith.constant 0 : index
    %266 = vector.load %arg10[%265, %c0_87, %c0_88] : memref<8x8x192xf32, #tpu.memory_space<vmem>>, vector<1x8x192xf32>
    %267 = vector.shape_cast %266 : vector<1x8x192xf32> to vector<8x192xf32>
    %cst_89 = arith.constant dense<0.000000e+00> : vector<8x192xf32>
    %268 = tpu.matmul %264, %38, %cst_89 {dimension_numbers = #tpu.dot_dimension_numbers<[1], [0], [0], [1], [0, 0, 1, 1], [], []>} : vector<8x64xf32>, vector<64x192xf32>, vector<8x192xf32> -> vector<8x192xf32>
    %269 = vector.extract_strided_slice %267 {offsets = [0, 0], sizes = [8, 128], strides = [1, 1]} : vector<8x192xf32> to vector<8x128xf32>
    %270 = vector.extract_strided_slice %268 {offsets = [0, 0], sizes = [8, 128], strides = [1, 1]} : vector<8x192xf32> to vector<8x128xf32>
    %271 = arith.addf %269, %270 : vector<8x128xf32>
    %272 = arith.negf %271 : vector<8x128xf32>
    %273 = math.exp %272 : vector<8x128xf32>
    %cst_90 = arith.constant 1.000000e+00 : f32
    %274 = vector.broadcast %cst_90 : f32 to vector<8x128xf32>
    %275 = arith.addf %274, %273 : vector<8x128xf32>
    %276 = arith.divf %274, %275 : vector<8x128xf32>
    %277 = vector.extract_strided_slice %276 {offsets = [0, 0], sizes = [8, 64], strides = [1, 1]} : vector<8x128xf32> to vector<8x64xf32>
    %278 = vector.extract_strided_slice %276 {offsets = [0, 64], sizes = [8, 64], strides = [1, 1]} : vector<8x128xf32> to vector<8x64xf32>
    %279 = vector.extract_strided_slice %267 {offsets = [0, 128], sizes = [8, 64], strides = [1, 1]} : vector<8x192xf32> to vector<8x64xf32>
    %280 = vector.extract_strided_slice %268 {offsets = [0, 128], sizes = [8, 64], strides = [1, 1]} : vector<8x192xf32> to vector<8x64xf32>
    %281 = arith.addf %280, %41 : vector<8x64xf32>
    %282 = arith.mulf %277, %281 : vector<8x64xf32>
    %283 = arith.addf %279, %282 : vector<8x64xf32>
    %284 = math.tanh %283 : vector<8x64xf32>
    %cst_91 = arith.constant 1.000000e+00 : f32
    %285 = vector.broadcast %cst_91 : f32 to vector<8x64xf32>
    %286 = arith.subf %285, %278 : vector<8x64xf32>
    %287 = arith.mulf %286, %284 : vector<8x64xf32>
    %288 = arith.mulf %278, %264 : vector<8x64xf32>
    %289 = arith.addf %287, %288 : vector<8x64xf32>
    %290 = arith.index_cast %c6_i32 : i32 to index
    %c0_92 = arith.constant 0 : index
    %c0_93 = arith.constant 0 : index
    %291 = vector.load %arg5[%290, %c0_92, %c0_93] : memref<8x8x64xf32, #tpu.memory_space<vmem>>, vector<1x8x64xf32>
    %292 = vector.shape_cast %291 : vector<1x8x64xf32> to vector<8x64xf32>
    %293 = arith.mulf %292, %289 : vector<8x64xf32>
    %294 = arith.index_cast %c6_i32 : i32 to index
    %c0_94 = arith.constant 0 : index
    %c0_95 = arith.constant 0 : index
    %295 = vector.load %arg8[%294, %c0_94, %c0_95] : memref<8x8x64xf32, #tpu.memory_space<vmem>>, vector<1x8x64xf32>
    %296 = vector.shape_cast %295 : vector<1x8x64xf32> to vector<8x64xf32>
    %297 = vector.shape_cast %293 : vector<8x64xf32> to vector<1x8x64xf32>
    tpu.vector_store %arg8[%294, %c0_94, %c0_95], %297 {strides = array<i32>} : memref<8x8x64xf32, #tpu.memory_space<vmem>>, vector<1x8x64xf32>,
    %cst_96 = arith.constant 1.000000e+00 : f32
    %298 = vector.broadcast %cst_96 : f32 to vector<8x64xf32>
    %299 = arith.subf %298, %292 : vector<8x64xf32>
    %300 = arith.mulf %299, %264 : vector<8x64xf32>
    %301 = arith.addf %293, %300 : vector<8x64xf32>
    %c7_i32 = arith.constant 7 : i32
    %302 = arith.index_cast %c7_i32 : i32 to index
    %c0_97 = arith.constant 0 : index
    %c0_98 = arith.constant 0 : index
    %303 = vector.load %arg10[%302, %c0_97, %c0_98] : memref<8x8x192xf32, #tpu.memory_space<vmem>>, vector<1x8x192xf32>
    %304 = vector.shape_cast %303 : vector<1x8x192xf32> to vector<8x192xf32>
    %cst_99 = arith.constant dense<0.000000e+00> : vector<8x192xf32>
    %305 = tpu.matmul %301, %38, %cst_99 {dimension_numbers = #tpu.dot_dimension_numbers<[1], [0], [0], [1], [0, 0, 1, 1], [], []>} : vector<8x64xf32>, vector<64x192xf32>, vector<8x192xf32> -> vector<8x192xf32>
    %306 = vector.extract_strided_slice %304 {offsets = [0, 0], sizes = [8, 128], strides = [1, 1]} : vector<8x192xf32> to vector<8x128xf32>
    %307 = vector.extract_strided_slice %305 {offsets = [0, 0], sizes = [8, 128], strides = [1, 1]} : vector<8x192xf32> to vector<8x128xf32>
    %308 = arith.addf %306, %307 : vector<8x128xf32>
    %309 = arith.negf %308 : vector<8x128xf32>
    %310 = math.exp %309 : vector<8x128xf32>
    %cst_100 = arith.constant 1.000000e+00 : f32
    %311 = vector.broadcast %cst_100 : f32 to vector<8x128xf32>
    %312 = arith.addf %311, %310 : vector<8x128xf32>
    %313 = arith.divf %311, %312 : vector<8x128xf32>
    %314 = vector.extract_strided_slice %313 {offsets = [0, 0], sizes = [8, 64], strides = [1, 1]} : vector<8x128xf32> to vector<8x64xf32>
    %315 = vector.extract_strided_slice %313 {offsets = [0, 64], sizes = [8, 64], strides = [1, 1]} : vector<8x128xf32> to vector<8x64xf32>
    %316 = vector.extract_strided_slice %304 {offsets = [0, 128], sizes = [8, 64], strides = [1, 1]} : vector<8x192xf32> to vector<8x64xf32>
    %317 = vector.extract_strided_slice %305 {offsets = [0, 128], sizes = [8, 64], strides = [1, 1]} : vector<8x192xf32> to vector<8x64xf32>
    %318 = arith.addf %317, %41 : vector<8x64xf32>
    %319 = arith.mulf %314, %318 : vector<8x64xf32>
    %320 = arith.addf %316, %319 : vector<8x64xf32>
    %321 = math.tanh %320 : vector<8x64xf32>
    %cst_101 = arith.constant 1.000000e+00 : f32
    %322 = vector.broadcast %cst_101 : f32 to vector<8x64xf32>
    %323 = arith.subf %322, %315 : vector<8x64xf32>
    %324 = arith.mulf %323, %321 : vector<8x64xf32>
    %325 = arith.mulf %315, %301 : vector<8x64xf32>
    %326 = arith.addf %324, %325 : vector<8x64xf32>
    %327 = arith.index_cast %c7_i32 : i32 to index
    %c0_102 = arith.constant 0 : index
    %c0_103 = arith.constant 0 : index
    %328 = vector.load %arg5[%327, %c0_102, %c0_103] : memref<8x8x64xf32, #tpu.memory_space<vmem>>, vector<1x8x64xf32>
    %329 = vector.shape_cast %328 : vector<1x8x64xf32> to vector<8x64xf32>
    %330 = arith.mulf %329, %326 : vector<8x64xf32>
    %331 = arith.index_cast %c7_i32 : i32 to index
    %c0_104 = arith.constant 0 : index
    %c0_105 = arith.constant 0 : index
    %332 = vector.load %arg8[%331, %c0_104, %c0_105] : memref<8x8x64xf32, #tpu.memory_space<vmem>>, vector<1x8x64xf32>
    %333 = vector.shape_cast %332 : vector<1x8x64xf32> to vector<8x64xf32>
    %334 = vector.shape_cast %330 : vector<8x64xf32> to vector<1x8x64xf32>
    tpu.vector_store %arg8[%331, %c0_104, %c0_105], %334 {strides = array<i32>} : memref<8x8x64xf32, #tpu.memory_space<vmem>>, vector<1x8x64xf32>,
    %cst_106 = arith.constant 1.000000e+00 : f32
    %335 = vector.broadcast %cst_106 : f32 to vector<8x64xf32>
    %336 = arith.subf %335, %329 : vector<8x64xf32>
    %337 = arith.mulf %336, %301 : vector<8x64xf32>
    %338 = arith.addf %330, %337 : vector<8x64xf32>
    %c8_i32 = arith.constant 8 : i32
    %c0_107 = arith.constant 0 : index
    %c0_108 = arith.constant 0 : index
    %339 = vector.load %arg6[%c0_107, %c0_108] : memref<64x32xf32, #tpu.memory_space<vmem>>, vector<64x32xf32>
    %cst_109 = arith.constant dense<0.000000e+00> : vector<8x32xf32>
    %340 = tpu.matmul %338, %339, %cst_109 {dimension_numbers = #tpu.dot_dimension_numbers<[1], [0], [0], [1], [0, 0, 1, 1], [], []>} : vector<8x64xf32>, vector<64x32xf32>, vector<8x32xf32> -> vector<8x32xf32>
    %c0_110 = arith.constant 0 : index
    %c0_111 = arith.constant 0 : index
    %341 = vector.load %arg7[%c0_110, %c0_111] : memref<1x32xf32, #tpu.memory_space<vmem>>, vector<1x32xf32>
    %342 = vector.broadcast %341 : vector<1x32xf32> to vector<8x32xf32>
    %343 = arith.addf %340, %342 : vector<8x32xf32>
    %344 = math.tanh %343 : vector<8x32xf32>
    %c0_112 = arith.constant 0 : index
    %c0_113 = arith.constant 0 : index
    %345 = vector.load %arg9[%c0_112, %c0_113] : memref<8x32xf32, #tpu.memory_space<vmem>>, vector<8x32xf32>
    tpu.vector_store %arg9[%c0_112, %c0_113], %344 {strides = array<i32>} : memref<8x32xf32, #tpu.memory_space<vmem>>, vector<8x32xf32>,
    return
  }
}

</mosaic_0001>

<bundles_post_ra>
// kernel: tpu_custom_call.1
= control target key start
LH: loop header
LB: loop body
LE: loop exit
PB: predicated region body
PF: predicated region fallthrough
CT: control target
= control target key end

     0   :  { %15 = vsyncpa [#allocation4], 0  ;;  %s2038_s0 = inlined_call_operand.vmem [shape: bf16[64,64], index: 0, kind: input, shape index: {}]   ;;  %s2039_s1 = inlined_call_operand.vmem [shape: bf16[64,192], index: 1, kind: input, shape index: {}]   ;;  %s2040_s2 = inlined_call_operand.vmem [shape: f32[1,192], index: 2, kind: input, shape index: {}]   ;;  %s2041_s3 = inlined_call_operand.hbm [shape: f32[64,192], index: 3, kind: input, shape index: {}]   ;;  %s2042_s4 = inlined_call_operand.vmem [shape: f32[1,64], index: 4, kind: input, shape index: {}]   ;;  %s2043_s5 = inlined_call_operand.hbm [shape: f32[8,8,64], index: 5, kind: input, shape index: {}]   ;;  %s2044_s6 = inlined_call_operand.vmem [shape: f32[64,32], index: 6, kind: input, shape index: {}]   ;;  %s2045_s7 = inlined_call_operand.vmem [shape: f32[1,32], index: 7, kind: input, shape index: {}]   ;;  %s2046_s8 = inlined_call_operand.hbm [shape: f32[8,8,64], index: 8, kind: output, shape index: {0}]   ;;  %s2047_s9 = inlined_call_operand.hbm [shape: f32[8,32], index: 9, kind: output, shape index: {1}]  }
   0x1   :  { %16 = vsyncpa [#allocation7], 0 }
   0x2   :  { %17 = vsyncpa [#allocation5], 0 }
   0x3   :  { %18 = vsyncpa [#allocation10], 0  ;;  %s1657_s30 = smov [#allocation3]   ;;  %s1561_s13 = scalar_lea.hbm %s2041_s3, 2048 }
   0x4   :  { %s30_s10 = sshll.u32 %s1657_s30, 4  ;;  %p1562_p0 = scmp.ne.s32.totalorder %s2041_s3, %s1561_s13  ;;  %s31_s10 = int_to_ptr.vmem [resolvable:$true] %s30_s10 }
   0x5   :  { %p1565_p1 = scmp.lt.u32.totalorder %s1561_s13, %s2041_s3 }
   0x7   :  { %p1567_p2 = pnand %p1565_p1, %p1562_p0 }
   0x9   :  { %1570 = shalt.err (!%p1567_p2)
}
   0xa   :  { %s1571_s18 = scalar_lea.vmem %s31_s10, 2048  ;;  %p1576_p4 = scmp.lt.s32.totalorder %s31_s10, %s31_s10 }
   0xb   :  { %p1572_p3 = scmp.ne.s32.totalorder %s31_s10, %s1571_s18  ;;  %p1577_p5 = scmp.lt.s32.totalorder %s1571_s18, %s1571_s18 }
   0xd   :  { %p1578_p6 = por %p1577_p5, %p1576_p4 }
   0xf   :  { %p1579_p7 = pnand %p1578_p6, %p1572_p3 }
  0x11   :  { %1582 = shalt.err (!%p1579_p7)
}
  0x12   :  { %s1658_s19 = smov 256   ;;  %s1659_s20 = smov 16  }
  0x13   :  { %36 = dma.hbm_to_vmem [thread:$0]  %s2041_s3, 2048, %s31_s10, [#allocation4], %s1658_s19, %s1658_s19, %s1659_s20  }
  0x14   :  { %s1660_s23 = smov [#allocation6]   ;;  %s1583_s27 = scalar_lea.hbm %s2043_s5, 1024 }
  0x15   :  { %s44_s24 = sshll.u32 %s1660_s23, 4  ;;  %p1584_p8 = scmp.ne.s32.totalorder %s2043_s5, %s1583_s27  ;;  %s45_s24 = int_to_ptr.vmem [resolvable:$true] %s44_s24 }
  0x16   :  { %p1587_p9 = scmp.lt.u32.totalorder %s1583_s27, %s2043_s5 }
  0x18   :  { %p1589_p10 = pnand %p1587_p9, %p1584_p8 }
  0x1a   :  { %1592 = shalt.err (!%p1589_p10)
}
  0x1b   :  { %s1593_s12 = scalar_lea.vmem %s45_s24, 1024  ;;  %p1598_p12 = scmp.lt.s32.totalorder %s45_s24, %s45_s24 }
  0x1c   :  { %p1594_p11 = scmp.ne.s32.totalorder %s45_s24, %s1593_s12  ;;  %p1599_p13 = scmp.lt.s32.totalorder %s1593_s12, %s1593_s12 }
  0x1e   :  { %p1600_p0 = por %p1599_p13, %p1598_p12 }
  0x20   :  { %p1601_p1 = pnand %p1600_p0, %p1594_p11 }
  0x22   :  { %1604 = shalt.err (!%p1601_p1)
}
  0x23   :  { %s1661_s3 = smov 128   ;;  %s1662_s10 = smov 8  }
  0x24   :  { %50 = dma.hbm_to_vmem [thread:$0]  %s2043_s5, 1024, %s45_s24, [#allocation7], %s1661_s3, %s1661_s3, %s1662_s10  }
  0x25   :  { %1649 = dma.done.wait [#allocation4], 2048  }
  0x26   :  { %1650 = vsyncadd [#allocation4], 4294965248 }
  0x27   :  { %1651 = dma.done.wait [#allocation7], 1024  }
  0x28   :  { %1652 = vsyncadd [#allocation7], 4294966272  ;;  %v1663_v0 = vmov 0   ;;  %v1664_v1 = vmov 0.0   ;;  %v1495_v2 = vld [vmem:[%s2039_s1 + $0x4] ss:$8 sps:$4 sm:$0xff]   ;;  %v80_v35 = vlaneseq }
  0x29   :  { %195 = vmatprep.mubr.bf16.mxu0 %v1663_v0  ;;  %351 = vmatprep.mubr.f32.mxu1 %v1664_v1  ;;  %v1497_v3 = vld [vmem:[%s2039_s1] ss:$8 sps:$4 sm:$0xff]   ;;  %v1498_v4 = vld [vmem:[%s2039_s1 + $0x14] ss:$8 sps:$4 sm:$0xff]   ;;  %v1500_v5 = vld [vmem:[%s2039_s1 + $0x10] ss:$8 sps:$4 sm:$0xff]  }
  0x2a   :  { %163 = vmatprep.subr.bf16.mxu0 %v1495_v2  ;;  %v1501_v6 = vld [vmem:[%s2039_s1 + $0x24] ss:$8 sps:$4 sm:$0xff]   ;;  %v262_v8 = vld [vmem:[#allocation3 + $0x18] sm:$0xff]  ;;  %v261_v11 = vld [vmem:[#allocation3 + $0x10] sm:$0xff]  ;;  %vm150_vm0 = vcmask 523264   ;;  %v81_v36 = vshrl.u32 %v80_v35, 7 }
  0x2b   :  { %164 = vmatpush1.bf16.msra.mxu0 %v1497_v3  ;;  %v260_v7 = vld [vmem:[#allocation3 + $0x8] sm:$0xff]  ;;  %v259_v9 = vld [vmem:[#allocation3] sm:$0xff]  ;;  %v266_v15 = vld [vmem:[#allocation3 + $0x38] sm:$0xff]  ;;  %s1665_s14 = smov 64   ;;  %vm1667_vm1 = vmmov 0  }
  0x2c   :  { %165 = vmatprep.subr.bf16.mxu0 %v1498_v4  ;;  %v1764_v10 = vpack.c.bf16 %v262_v8, %v260_v7  ;;  %v1503_v12 = vld [vmem:[%s2039_s1 + $0x20] ss:$8 sps:$4 sm:$0xff]   ;;  %v1769_v13 = vpack.c.bf16 %v261_v11, %v259_v9  ;;  %v265_v17 = vld [vmem:[#allocation3 + $0x30] sm:$0xff]  ;;  %v270_v22 = vld [vmem:[#allocation3 + $0x58] sm:$0xff]  ;;  %v82_v37 = vsub.s32 0, %v81_v36  ;;  %v86_v39 = vsub.s32 1, %v81_v36 }
  0x2d   :  { %v264_v14 = vld [vmem:[#allocation3 + $0x28] sm:$0xff]  ;;  %v263_v16 = vld [vmem:[#allocation3 + $0x20] sm:$0xff]  ;;  %v1504_v18 = vld [vmem:[%s2039_s1 + $0x34] ss:$8 sps:$4 sm:$0xff]  }
  0x2e   :  { %1343 = vmatprep.subr.bf16.mxu1 %v1764_v10  ;;  %v1776_v19 = vpack.c.bf16 %v266_v15, %v264_v14  ;;  %v1778_v20 = vpack.c.bf16 %v265_v17, %v263_v16  ;;  %v268_v21 = vld [vmem:[#allocation3 + $0x48] sm:$0xff]  ;;  %v267_v23 = vld [vmem:[#allocation3 + $0x40] sm:$0xff]  ;;  %v269_v25 = vld [vmem:[#allocation3 + $0x50] sm:$0xff] }
  0x2f   :  { %166 = vmatpush1.bf16.msra.mxu0 %v1500_v5  ;;  %1345 = vmatpush1.bf16.msra.mxu1 %v1769_v13  ;;  %v1781_v24 = vpack.c.bf16 %v270_v22, %v268_v21  ;;  %v272_v26 = vld [vmem:[#allocation3 + $0x68] sm:$0xff]  ;;  %v274_v27 = vld [vmem:[#allocation3 + $0x78] sm:$0xff]  ;;  %v271_v29 = vld [vmem:[#allocation3 + $0x60] sm:$0xff]  ;;  %v1787_v31 = vpack.c.bf16 %v269_v25, %v267_v23 }
  0x30   :  { %167 = vmatprep.subr.bf16.mxu0 %v1501_v6  ;;  %1347 = vmatprep.subr.bf16.mxu1 %v1776_v19  ;;  %v1506_v28 = vld [vmem:[%s2039_s1 + $0x30] ss:$8 sps:$4 sm:$0xff]   ;;  %v1790_v32 = vpack.c.bf16 %v274_v27, %v272_v26  ;;  %v1507_v33 = vld [vmem:[%s2038_s0] sm:$0xff]  }
  0x31   :  { %v273_v30 = vld [vmem:[#allocation3 + $0x70] sm:$0xff]  ;;  %v78_v38 = vld [vmem:[%s2040_s2] sm:$0x3] }
  0x32   :  { %v1796_v34 = vpack.c.bf16 %v273_v30, %v271_v29  ;;  %v1825_v40 = vrot.slane %v78_v38, %v82_v37  ;;  %v1827_v41 = vrot.slane %v78_v38, %v86_v39  ;;  %v1838_v56 = vld [vmem:[%s2042_s4] ss:$0 sm:$0xff]  ;;  %v1509_v30 = vld [vmem:[%s2038_s0 + $0x10] sm:$0xff]  }
  0x33   :  { %168 = vmatpush1.bf16.msra.mxu0 %v1503_v12  ;;  %1349 = vmatpush1.bf16.msra.mxu1 %v1778_v20  ;;  %v377_v6 = vld [vmem:[#allocation6] sm:$0xff] }
  0x34   :  { %169 = vmatprep.subr.bf16.mxu0 %v1504_v18  ;;  %1351 = vmatprep.subr.bf16.mxu1 %v1781_v24  ;;  %v384_v7 = vsub.f32 1.0, %v377_v6 }
  0x36   :  { %v385_v8 = vmul.f32 0.0, %v384_v7 }
  0x37   :  { %170 = vmatpush1.bf16.msra.mxu0 %v1506_v28  ;;  %1353 = vmatpush1.bf16.msra.mxu1 %v1787_v31  ;;  %v1508_v28 = vld [vmem:[%s2038_s0 + $0x8] sm:$0xff]  }
  0x38   :  { %1375 = vmatprep.subr.bf16.mxu0 %v1764_v10  ;;  %1355 = vmatprep.subr.bf16.mxu1 %v1790_v32 }
  0x3a   :  { %1292 = vmatmul.mubr.msk.bf16.vlgmr.msra.gmra.mrb[0].mxu0 %vm150_vm0, %v1507_v33  ;;  %v1510_v33 = vld [vmem:[%s2038_s0 + $0x18] sm:$0xff]  }
  0x3b   :  { %1377 = vmatpush1.bf16.msra.mxu0 %v1769_v13  ;;  %205 = vmatprep.mubr.bf16.mxu0 %v1663_v0 }
  0x3c   :  { %1357 = vmatpush1.bf16.msra.mxu1 %v1796_v34  ;;  %1379 = vmatprep.subr.bf16.mxu0 %v1776_v19 }
  0x3d   :  { %1359 = vmatprep.subr.bf16.mxu1 %v1764_v10 }
  0x3f   :  { %352 = vmatmul.mubr.f32.vlgmr.msra.gmra.mrb[0].mxu1 %v1664_v1  ;;  %1381 = vmatpush1.bf16.msra.mxu0 %v1778_v20 }
  0x40   :  { %1361 = vmatpush1.bf16.msra.mxu1 %v1769_v13  ;;  %456 = vmatprep.mubr.f32.mxu1 %v1664_v1 }
  0x41   :  { %1363 = vmatprep.subr.bf16.mxu1 %v1776_v19  ;;  %1383 = vmatprep.subr.bf16.mxu0 %v1781_v24 }
  0x42   :  { %1293 = vmatmul.mubr.msk.bf16.gmra.mrb[4].mxu0 %vm150_vm0, %v1508_v28 }
  0x43   :  { %1385 = vmatpush1.bf16.msra.mxu0 %v1787_v31  ;;  %215 = vmatprep.mubr.bf16.mxu0 %v1663_v0 }
  0x44   :  { %1365 = vmatpush1.bf16.msra.mxu1 %v1778_v20  ;;  %1387 = vmatprep.subr.bf16.mxu0 %v1790_v32 }
  0x45   :  { %1367 = vmatprep.subr.bf16.mxu1 %v1781_v24 }
  0x47   :  { %1389 = vmatpush1.bf16.msra.mxu0 %v1796_v34 }
  0x48   :  { %1369 = vmatpush1.bf16.msra.mxu1 %v1787_v31  ;;  %1407 = vmatprep.subr.bf16.mxu0 %v1764_v10 }
  0x49   :  { %1371 = vmatprep.subr.bf16.mxu1 %v1790_v32 }
  0x4a   :  { %1294 = vmatmul.mubr.msk.bf16.gmra.mrb[8].mxu0 %vm150_vm0, %v1509_v30 }
  0x4b   :  { %225 = vmatprep.mubr.bf16.mxu0 %v1663_v0 }
  0x4c   :  { %1373 = vmatpush1.bf16.msra.mxu1 %v1796_v34 }
  0x4d   :  { %1391 = vmatprep.subr.bf16.mxu1 %v1764_v10 }
  0x52   :  { %1295 = vmatmul.mubr.msk.bf16.gmra.mrb[12].mxu0 %vm150_vm0, %v1510_v33 }
  0x53   :  { %566 = vmatprep.mubr.f32.mxu0 %v1664_v1 }
 0x10d   :  { %v197_v42 = vpop.f32.mrb[0].mxu0 }
 0x10e   :  { %v198_v43 = vadd.f32 %v197_v42, %v1825_v40  ;;  %v199_v44 = vpop.f32.mrb[1].mxu0 }
 0x10f   :  { %v200_v45 = vadd.f32 %v199_v44, %v1827_v41  ;;  %v201_v46 = vpop.f32.mrb[2].mxu0 }
 0x110   :  { %v202_v47 = vadd.f32 %v201_v46, %v1825_v40  ;;  %v203_v48 = vpop.f32.mrb[3].mxu0 }
 0x111   :  { %237 = vst.msk [vmem:[#allocation2 + $0x8] sm:$0xff] %vm150_vm0, %v200_v45  ;;  %v204_v49 = vadd.f32 %v203_v48, %v1827_v41 }
 0x112   :  { %v353_v50 = vpop.f32.mrb[0].mxu1 }
 0x113   :  { %240 = vst.msk [vmem:[#allocation2 + $0x18] sm:$0xff] %vm150_vm0, %v204_v49  ;;  %v358_v51 = vadd.f32 %v353_v50, %v198_v43  ;;  %v355_v52 = vpop.f32.mrb[1].mxu1 }
 0x114   :  { %v365_v57 = vadd.f32 %v1838_v56, %v355_v52 }
 0x115   :  { %v1297_v53 = vmul.f32 -1.442695, %v358_v51  ;;  %v207_v43 = vpop.f32.mrb[4].mxu0 }
 0x116   :  { %v208_v44 = vadd.f32 %v207_v43, %v1825_v40  ;;  %v209_v0 = vpop.f32.mrb[5].mxu0 }
 0x117   :  { %1511 = vpow2.f32 %v1297_v53  ;;  %v210_v45 = vadd.f32 %v209_v0, %v1827_v41  ;;  %v211_v46 = vpop.f32.mrb[6].mxu0 }
 0x118   :  { %v283_v60 = vld [vmem:[#allocation2 + $0x8] sm:$0xff]  ;;  %v1880_v48 = vadd.f32 %v211_v46, %v1825_v40  ;;  %v213_v49 = vpop.f32.mrb[7].mxu0 }
 0x119   :  { %243 = vst.msk [vmem:[#allocation2 + $0x28] sm:$0xff] %vm150_vm0, %v210_v45  ;;  %v214_v50 = vadd.f32 %v213_v49, %v1827_v41 }
 0x11a   :  { %v388_v26 = vld [vmem:[#allocation2 + $0x18] sm:$0xff] }
 0x11b   :  { %246 = vst.msk [vmem:[#allocation2 + $0x38] sm:$0xff] %vm150_vm0, %v214_v50 }
 0x11d   :  { %v217_v51 = vpop.f32.mrb[8].mxu0 }
 0x11e   :  { %v1885_v52 = vadd.f32 %v217_v51, %v1825_v40  ;;  %v219_v53 = vpop.f32.mrb[9].mxu0 }
 0x121   :  { %v1512_v54 = vpop.eup %1511 }
 0x122   :  { %v362_v55 = vadd.f32 1.0, %v1512_v54 }
 0x124   :  { %1513 = vrcp.f32 %v362_v55  ;;  %v220_v55 = vadd.f32 %v219_v53, %v1827_v41  ;;  %v608_v53 = vld [vmem:[#allocation2 + $0x38] sm:$0xff] }
 0x126   :  { %249 = vst.msk [vmem:[#allocation2 + $0x48] sm:$0xff] %vm150_vm0, %v220_v55 }
 0x12e   :  { %v1514_v58 = vpop.eup %1513 }
 0x12f   :  { %v366_v59 = vmul.f32 %v1514_v58, %v365_v57  ;;  %v369_v63 = vsub.f32 1.0, %v1514_v58  ;;  %v375_v3 = vmul.f32 0.0, %v1514_v58  ;;  %v221_v57 = vpop.f32.mrb[10].mxu0 }
 0x130   :  { %v1890_v58 = vadd.f32 %v221_v57, %v1825_v40 }
 0x131   :  { %v367_v61 = vadd.f32 %v366_v59, %v283_v60  ;;  %v223_v59 = vpop.f32.mrb[11].mxu0 }
 0x132   :  { %v224_v60 = vadd.f32 %v223_v59, %v1827_v41 }
 0x133   :  { %1515 = vtanh.f32 %v367_v61  ;;  %v227_v61 = vpop.f32.mrb[12].mxu0 }
 0x134   :  { %252 = vst.msk [vmem:[#allocation2 + $0x58] sm:$0xff] %vm150_vm0, %v224_v60 }
 0x13d   :  { %v1516_v62 = vpop.eup %1515 }
 0x13e   :  { %371 = vrot.lane.b32.xlu0 %v1516_v62, %s1665_s14 }
 0x1b0   :  { %v372_v2 = vpop.permute.xlu0 %371 }
 0x1b1   :  { %v374_v4 = vmul.f32 %v372_v2, %v369_v63  ;;  %v1895_v63 = vadd.f32 %v227_v61, %v1825_v40  ;;  %v229_v2 = vpop.f32.mrb[13].mxu0 }
 0x1b3   :  { %v376_v5 = vadd.f32 %v375_v3, %v374_v4 }
 0x1b5   :  { %379 = vrot.lane.b32.xlu0 %v376_v5, %s1665_s14  ;;  %v230_v5 = vadd.f32 %v229_v2, %v1827_v41 }
 0x1b7   :  { %255 = vst.msk [vmem:[#allocation2 + $0x68] sm:$0xff] %vm150_vm0, %v230_v5 }
 0x227   :  { %v380_v9 = vpop.permute.xlu0 %379 }
 0x228   :  { %v382_v11 = vmul.f32 %v380_v9, %v377_v6  ;;  %v231_v6 = vpop.f32.mrb[14].mxu0 }
 0x229   :  { %v1901_v7 = vadd.f32 %v231_v6, %v1825_v40 }
 0x22a   :  { %383 = vst.msk [vmem:[#allocation8] sm:$0xff] %vm150_vm0, %v382_v11  ;;  %v1844_v12 = vadd.f32 %v385_v8, %v382_v11  ;;  %v233_v8 = vpop.f32.mrb[15].mxu0 }
 0x22b   :  { %v234_v11 = vadd.f32 %v233_v8, %v1827_v41 }
 0x22c   :  { %1298 = vmatmul.mubr.msk.f32.vlgmr.msra.gmra.mrb[2].mxu1 %vm150_vm0, %v1844_v12 }
 0x22d   :  { %1393 = vmatpush1.bf16.msra.mxu1 %v1769_v13  ;;  %676 = vmatprep.mubr.f32.mxu1 %v1664_v1  ;;  %258 = vst.msk [vmem:[#allocation2 + $0x78] sm:$0xff] %vm150_vm0, %v234_v11 }
 0x22e   :  { %1395 = vmatprep.subr.bf16.mxu1 %v1776_v19 }
 0x231   :  { %1397 = vmatpush1.bf16.msra.mxu1 %v1778_v20 }
 0x232   :  { %1399 = vmatprep.subr.bf16.mxu1 %v1781_v24 }
 0x235   :  { %1401 = vmatpush1.bf16.msra.mxu1 %v1787_v31 }
 0x236   :  { %1403 = vmatprep.subr.bf16.mxu1 %v1790_v32 }
 0x239   :  { %1405 = vmatpush1.bf16.msra.mxu1 %v1796_v34 }
 0x23a   :  { %1423 = vmatprep.subr.bf16.mxu1 %v1764_v10 }
 0x2ff   :  { %v458_v14 = vpop.f32.mrb[2].mxu1 }
 0x300   :  { %v463_v15 = vadd.f32 %v458_v14, %v202_v47  ;;  %v460_v16 = vpop.f32.mrb[3].mxu1  ;;  %v486_v47 = vld [vmem:[#allocation6 + $0x8] sm:$0xff] }
 0x301   :  { %v470_v22 = vadd.f32 %v1838_v56, %v460_v16  ;;  %v494_v54 = vsub.f32 1.0, %v486_v47 }
 0x302   :  { %v1299_v17 = vmul.f32 -1.442695, %v463_v15 }
 0x303   :  { %v495_v3 = vmul.f32 %v494_v54, %v1844_v12 }
 0x304   :  { %1517 = vpow2.f32 %v1299_v17 }
 0x30e   :  { %v1518_v18 = vpop.eup %1517 }
 0x30f   :  { %v467_v21 = vadd.f32 1.0, %v1518_v18 }
 0x311   :  { %1519 = vrcp.f32 %v467_v21 }
 0x31b   :  { %v1520_v23 = vpop.eup %1519 }
 0x31c   :  { %v471_v25 = vmul.f32 %v1520_v23, %v470_v22  ;;  %v474_v36 = vsub.f32 1.0, %v1520_v23  ;;  %v498_v22 = vld [vmem:[#allocation2 + $0x28] sm:$0xff] }
 0x31e   :  { %v472_v27 = vadd.f32 %v471_v25, %v388_v26 }
 0x320   :  { %1521 = vtanh.f32 %v472_v27 }
 0x32a   :  { %v1522_v29 = vpop.eup %1521 }
 0x32b   :  { %476 = vrot.lane.b32.xlu1 %v1522_v29, %s1665_s14 }
 0x32f   :  { %480 = vrot.lane.b32.xlu1 %v1844_v12, %s1665_s14 }
 0x39d   :  { %v477_v35 = vpop.permute.xlu1 %476 }
 0x39e   :  { %v479_v38 = vmul.f32 %v477_v35, %v474_v36  ;;  %v596_v35 = vld [vmem:[#allocation6 + $0x10] sm:$0xff] }
 0x39f   :  { %v604_v36 = vsub.f32 1.0, %v596_v35 }
 0x3a1   :  { %v481_v37 = vpop.permute.xlu1 %480 }
 0x3a2   :  { %v483_v39 = vmul.f32 %v1520_v23, %v481_v37 }
 0x3a4   :  { %v484_v42 = vadd.f32 %v483_v39, %v479_v38 }
 0x3a6   :  { %488 = vrot.lane.b32.xlu0 %v484_v42, %s1665_s14 }
 0x418   :  { %v489_v62 = vpop.permute.xlu0 %488 }
 0x419   :  { %v491_v4 = vmul.f32 %v489_v62, %v486_v47  ;;  %v706_v62 = vld [vmem:[#allocation6 + $0x18] sm:$0xff] }
 0x41a   :  { %v714_v2 = vsub.f32 1.0, %v706_v62 }
 0x41b   :  { %493 = vst.msk [vmem:[#allocation8 + $0x8] sm:$0xff] %vm150_vm0, %v491_v4  ;;  %v496_v9 = vadd.f32 %v495_v3, %v491_v4 }
 0x41d   :  { %590 = vrot.lane.b32.xlu0 %v496_v9, %s1665_s14  ;;  %1300 = vmatmul.mubr.msk.f32.vlgmr.msra.gmra.mrb[16].mxu0 %vm150_vm0, %v496_v9  ;;  %v605_v38 = vmul.f32 %v604_v36, %v496_v9 }
 0x41e   :  { %1409 = vmatpush1.bf16.msra.mxu0 %v1769_v13  ;;  %786 = vmatprep.mubr.f32.mxu0 %v1664_v1 }
 0x41f   :  { %1411 = vmatprep.subr.bf16.mxu0 %v1776_v19 }
 0x422   :  { %1413 = vmatpush1.bf16.msra.mxu0 %v1778_v20 }
 0x423   :  { %1415 = vmatprep.subr.bf16.mxu0 %v1781_v24 }
 0x426   :  { %1417 = vmatpush1.bf16.msra.mxu0 %v1787_v31 }
 0x427   :  { %1419 = vmatprep.subr.bf16.mxu0 %v1790_v32 }
 0x42a   :  { %1421 = vmatpush1.bf16.msra.mxu0 %v1796_v34 }
 0x42b   :  { %1439 = vmatprep.subr.bf16.mxu0 %v1764_v10 }
 0x48f   :  { %v591_v27 = vpop.permute.xlu0 %590 }
 0x4f0   :  { %v568_v40 = vpop.f32.mrb[16].mxu0 }
 0x4f1   :  { %v573_v41 = vadd.f32 %v568_v40, %v208_v44  ;;  %v570_v12 = vpop.f32.mrb[17].mxu0 }
 0x4f2   :  { %v580_v17 = vadd.f32 %v1838_v56, %v570_v12 }
 0x4f3   :  { %v1301_v14 = vmul.f32 -1.442695, %v573_v41 }
 0x4f5   :  { %1523 = vpow2.f32 %v1301_v14 }
 0x4ff   :  { %v1524_v15 = vpop.eup %1523 }
 0x500   :  { %v577_v16 = vadd.f32 1.0, %v1524_v15 }
 0x502   :  { %1525 = vrcp.f32 %v577_v16 }
 0x50c   :  { %v1526_v18 = vpop.eup %1525 }
 0x50d   :  { %v581_v21 = vmul.f32 %v1526_v18, %v580_v17  ;;  %v584_v26 = vsub.f32 1.0, %v1526_v18  ;;  %v593_v29 = vmul.f32 %v1526_v18, %v591_v27  ;;  %v718_v17 = vld [vmem:[#allocation2 + $0x48] sm:$0xff] }
 0x50f   :  { %v582_v23 = vadd.f32 %v581_v21, %v498_v22 }
 0x511   :  { %1527 = vtanh.f32 %v582_v23 }
 0x51b   :  { %v1528_v25 = vpop.eup %1527 }
 0x51c   :  { %586 = vrot.lane.b32.xlu1 %v1528_v25, %s1665_s14 }
 0x58e   :  { %v587_v28 = vpop.permute.xlu1 %586 }
 0x58f   :  { %v589_v30 = vmul.f32 %v587_v28, %v584_v26  ;;  %v816_v28 = vld [vmem:[#allocation6 + $0x20] sm:$0xff] }
 0x591   :  { %v594_v33 = vadd.f32 %v593_v29, %v589_v30  ;;  %v824_v29 = vsub.f32 1.0, %v816_v28 }
 0x593   :  { %598 = vrot.lane.b32.xlu1 %v594_v33, %s1665_s14 }
 0x605   :  { %v599_v37 = vpop.permute.xlu1 %598 }
 0x606   :  { %v601_v39 = vmul.f32 %v599_v37, %v596_v35 }
 0x608   :  { %603 = vst.msk [vmem:[#allocation8 + $0x10] sm:$0xff] %vm150_vm0, %v601_v39  ;;  %v606_v42 = vadd.f32 %v605_v38, %v601_v39 }
 0x60a   :  { %700 = vrot.lane.b32.xlu1 %v606_v42, %s1665_s14  ;;  %1302 = vmatmul.mubr.msk.f32.vlgmr.msra.gmra.mrb[4].mxu1 %vm150_vm0, %v606_v42  ;;  %v715_v4 = vmul.f32 %v714_v2, %v606_v42 }
 0x60b   :  { %1425 = vmatpush1.bf16.msra.mxu1 %v1769_v13  ;;  %896 = vmatprep.mubr.f32.mxu1 %v1664_v1 }
 0x60c   :  { %1427 = vmatprep.subr.bf16.mxu1 %v1776_v19 }
 0x60f   :  { %1429 = vmatpush1.bf16.msra.mxu1 %v1778_v20 }
 0x610   :  { %1431 = vmatprep.subr.bf16.mxu1 %v1781_v24 }
 0x613   :  { %1433 = vmatpush1.bf16.msra.mxu1 %v1787_v31 }
 0x614   :  { %1435 = vmatprep.subr.bf16.mxu1 %v1790_v32 }
 0x617   :  { %1437 = vmatpush1.bf16.msra.mxu1 %v1796_v34 }
 0x618   :  { %1455 = vmatprep.subr.bf16.mxu1 %v1764_v10 }
 0x67c   :  { %v701_v57 = vpop.permute.xlu1 %700 }
 0x6dd   :  { %v678_v43 = vpop.f32.mrb[4].mxu1 }
 0x6de   :  { %v683_v44 = vadd.f32 %v678_v43, %v1880_v48  ;;  %v680_v0 = vpop.f32.mrb[5].mxu1 }
 0x6df   :  { %v690_v49 = vadd.f32 %v1838_v56, %v680_v0 }
 0x6e0   :  { %v1303_v45 = vmul.f32 -1.442695, %v683_v44 }
 0x6e2   :  { %1529 = vpow2.f32 %v1303_v45 }
 0x6ec   :  { %v1530_v46 = vpop.eup %1529 }
 0x6ed   :  { %v687_v47 = vadd.f32 1.0, %v1530_v46 }
 0x6ef   :  { %1531 = vrcp.f32 %v687_v47 }
 0x6f9   :  { %v1532_v50 = vpop.eup %1531 }
 0x6fa   :  { %v691_v51 = vmul.f32 %v1532_v50, %v690_v49  ;;  %v694_v10 = vsub.f32 1.0, %v1532_v50  ;;  %v703_v48 = vmul.f32 %v1532_v50, %v701_v57  ;;  %v926_v49 = vld [vmem:[#allocation6 + $0x28] sm:$0xff] }
 0x6fb   :  { %v934_v50 = vsub.f32 1.0, %v926_v49 }
 0x6fc   :  { %v692_v54 = vadd.f32 %v691_v51, %v608_v53 }
 0x6fe   :  { %1533 = vtanh.f32 %v692_v54 }
 0x708   :  { %v1534_v55 = vpop.eup %1533 }
 0x709   :  { %696 = vrot.lane.b32.xlu0 %v1534_v55, %s1665_s14 }
 0x77b   :  { %v697_v59 = vpop.permute.xlu0 %696 }
 0x77c   :  { %v699_v60 = vmul.f32 %v697_v59, %v694_v10 }
 0x77e   :  { %v704_v61 = vadd.f32 %v703_v48, %v699_v60 }
 0x780   :  { %708 = vrot.lane.b32.xlu0 %v704_v61, %s1665_s14 }
 0x7f2   :  { %v709_v3 = vpop.permute.xlu0 %708 }
 0x7f3   :  { %v711_v5 = vmul.f32 %v709_v3, %v706_v62 }
 0x7f5   :  { %713 = vst.msk [vmem:[#allocation8 + $0x18] sm:$0xff] %vm150_vm0, %v711_v5  ;;  %v716_v6 = vadd.f32 %v715_v4, %v711_v5  ;;  %v938_v4 = vld [vmem:[#allocation2 + $0x68] sm:$0xff] }
 0x7f7   :  { %810 = vrot.lane.b32.xlu0 %v716_v6, %s1665_s14  ;;  %1304 = vmatmul.mubr.msk.f32.vlgmr.msra.gmra.mrb[18].mxu0 %vm150_vm0, %v716_v6  ;;  %v825_v33 = vmul.f32 %v824_v29, %v716_v6 }
 0x7f8   :  { %1441 = vmatpush1.bf16.msra.mxu0 %v1769_v13  ;;  %1006 = vmatprep.mubr.f32.mxu0 %v1664_v1 }
 0x7f9   :  { %1443 = vmatprep.subr.bf16.mxu0 %v1776_v19 }
 0x7fc   :  { %1445 = vmatpush1.bf16.msra.mxu0 %v1778_v20 }
 0x7fd   :  { %1447 = vmatprep.subr.bf16.mxu0 %v1781_v24 }
 0x800   :  { %1449 = vmatpush1.bf16.msra.mxu0 %v1787_v31 }
 0x801   :  { %1451 = vmatprep.subr.bf16.mxu0 %v1790_v32 }
 0x804   :  { %1453 = vmatpush1.bf16.msra.mxu0 %v1796_v34 }
 0x869   :  { %v811_v23 = vpop.permute.xlu0 %810 }
 0x8ca   :  { %v788_v8 = vpop.f32.mrb[18].mxu0 }
 0x8cb   :  { %v793_v9 = vadd.f32 %v788_v8, %v1885_v52  ;;  %v790_v11 = vpop.f32.mrb[19].mxu0 }
 0x8cc   :  { %v800_v14 = vadd.f32 %v1838_v56, %v790_v11 }
 0x8cd   :  { %v1305_v40 = vmul.f32 -1.442695, %v793_v9 }
 0x8cf   :  { %1535 = vpow2.f32 %v1305_v40 }
 0x8d9   :  { %v1536_v41 = vpop.eup %1535 }
 0x8da   :  { %v797_v12 = vadd.f32 1.0, %v1536_v41 }
 0x8dc   :  { %1537 = vrcp.f32 %v797_v12  ;;  %v1036_v12 = vld [vmem:[#allocation6 + $0x30] sm:$0xff] }
 0x8e6   :  { %v1538_v15 = vpop.eup %1537 }
 0x8e7   :  { %v801_v16 = vmul.f32 %v1538_v15, %v800_v14  ;;  %v804_v22 = vsub.f32 1.0, %v1538_v15  ;;  %v813_v52 = vmul.f32 %v1538_v15, %v811_v23  ;;  %v1044_v14 = vsub.f32 1.0, %v1036_v12 }
 0x8e9   :  { %v802_v18 = vadd.f32 %v801_v16, %v718_v17 }
 0x8eb   :  { %1539 = vtanh.f32 %v802_v18 }
 0x8f5   :  { %v1540_v21 = vpop.eup %1539 }
 0x8f6   :  { %806 = vrot.lane.b32.xlu1 %v1540_v21, %s1665_s14 }
 0x968   :  { %v807_v25 = vpop.permute.xlu1 %806 }
 0x969   :  { %v809_v26 = vmul.f32 %v807_v25, %v804_v22 }
 0x96b   :  { %v814_v27 = vadd.f32 %v813_v52, %v809_v26 }
 0x96d   :  { %818 = vrot.lane.b32.xlu1 %v814_v27, %s1665_s14 }
 0x9df   :  { %v819_v30 = vpop.permute.xlu1 %818 }
 0x9e0   :  { %v821_v35 = vmul.f32 %v819_v30, %v816_v28  ;;  %v1048_v30 = vld [vmem:[#allocation2 + $0x78] sm:$0xff] }
 0x9e2   :  { %823 = vst.msk [vmem:[#allocation8 + $0x20] sm:$0xff] %vm150_vm0, %v821_v35  ;;  %v826_v36 = vadd.f32 %v825_v33, %v821_v35  ;;  %v1157_v35 = vld [vmem:[%s2044_s6] sm:$0xff] }
 0x9e4   :  { %920 = vrot.lane.b32.xlu1 %v826_v36, %s1665_s14  ;;  %1306 = vmatmul.mubr.msk.f32.vlgmr.msra.gmra.mrb[6].mxu1 %vm150_vm0, %v826_v36  ;;  %v935_v53 = vmul.f32 %v934_v50, %v826_v36  ;;  %v1159_v36 = vld [vmem:[%s2044_s6 + $0x10] sm:$0xff] }
 0x9e5   :  { %1457 = vmatpush1.bf16.msra.mxu1 %v1769_v13  ;;  %1116 = vmatprep.mubr.f32.mxu1 %v1664_v1 }
 0x9e6   :  { %1459 = vmatprep.subr.bf16.mxu1 %v1776_v19 }
 0x9e9   :  { %1461 = vmatpush1.bf16.msra.mxu1 %v1778_v20 }
 0x9ea   :  { %1463 = vmatprep.subr.bf16.mxu1 %v1781_v24  ;;  %v828_v24 = vld [vmem:[#allocation2 + $0x58] sm:$0xff] }
 0x9ed   :  { %1465 = vmatpush1.bf16.msra.mxu1 %v1787_v31 }
 0x9ee   :  { %1467 = vmatprep.subr.bf16.mxu1 %v1790_v32 }
 0x9f1   :  { %1469 = vmatpush1.bf16.msra.mxu1 %v1796_v34 }
 0xa56   :  { %v921_v34 = vpop.permute.xlu1 %920 }
 0xab7   :  { %v898_v37 = vpop.f32.mrb[6].mxu1 }
 0xab8   :  { %v903_v38 = vadd.f32 %v898_v37, %v1890_v58  ;;  %v900_v39 = vpop.f32.mrb[7].mxu1  ;;  %v1666_v37 = vmov 0.0|0.0  }
 0xab9   :  { %v910_v19 = vadd.f32 %v1838_v56, %v900_v39  ;;  %1470 = vmatprep.subr.bf16.mxu0 %v1666_v37 }
 0xaba   :  { %v1307_v42 = vmul.f32 -1.442695, %v903_v38  ;;  %v1160_v38 = vld [vmem:[%s2044_s6 + $0x18] sm:$0xff] }
 0xabb   :  { %v1474_v39 = vpack.c.bf16 %v1160_v38, %v1159_v36 }
 0xabc   :  { %1541 = vpow2.f32 %v1307_v42  ;;  %v1161_v42 = vld [vmem:[%s2044_s6 + $0x20] sm:$0xff] }
 0xac6   :  { %v1542_v13 = vpop.eup %1541 }
 0xac7   :  { %v907_v43 = vadd.f32 1.0, %v1542_v13  ;;  %v1162_v13 = vld [vmem:[%s2044_s6 + $0x28] sm:$0xff] }
 0xac9   :  { %1543 = vrcp.f32 %v907_v43  ;;  %v1477_v43 = vpack.c.bf16 %v1162_v13, %v1161_v42 }
 0xad3   :  { %v1544_v20 = vpop.eup %1543 }
 0xad4   :  { %v911_v44 = vmul.f32 %v1544_v20, %v910_v19  ;;  %v914_v32 = vsub.f32 1.0, %v1544_v20  ;;  %v923_v58 = vmul.f32 %v1544_v20, %v921_v34  ;;  %v1163_v20 = vld [vmem:[%s2044_s6 + $0x30] sm:$0xff] }
 0xad6   :  { %v912_v0 = vadd.f32 %v911_v44, %v828_v24  ;;  %v1164_v44 = vld [vmem:[%s2044_s6 + $0x38] sm:$0xff] }
 0xad7   :  { %v1480_v24 = vpack.c.bf16 %v1164_v44, %v1163_v20 }
 0xad8   :  { %1545 = vtanh.f32 %v912_v0 }
 0xae2   :  { %v1546_v31 = vpop.eup %1545 }
 0xae3   :  { %916 = vrot.lane.b32.xlu0 %v1546_v31, %s1665_s14 }
 0xb55   :  { %v917_v45 = vpop.permute.xlu0 %916 }
 0xb56   :  { %v919_v46 = vmul.f32 %v917_v45, %v914_v32 }
 0xb58   :  { %v924_v47 = vadd.f32 %v923_v58, %v919_v46  ;;  %v1146_v46 = vld [vmem:[#allocation6 + $0x38] sm:$0xff] }
 0xb5a   :  { %928 = vrot.lane.b32.xlu0 %v924_v47, %s1665_s14  ;;  %v1154_v47 = vsub.f32 1.0, %v1146_v46 }
 0xbcc   :  { %v929_v51 = vpop.permute.xlu0 %928 }
 0xbcd   :  { %v931_v54 = vmul.f32 %v929_v51, %v926_v49 }
 0xbcf   :  { %933 = vst.msk [vmem:[#allocation8 + $0x28] sm:$0xff] %vm150_vm0, %v931_v54  ;;  %v936_v55 = vadd.f32 %v935_v53, %v931_v54 }
 0xbd1   :  { %1030 = vrot.lane.b32.xlu0 %v936_v55, %s1665_s14  ;;  %1308 = vmatmul.mubr.msk.f32.vlgmr.msra.gmra.mrb[20].mxu0 %vm150_vm0, %v936_v55  ;;  %v1045_v16 = vmul.f32 %v1044_v14, %v936_v55 }
 0xbd2   :  { %1339 = vmatprep.mubr.msk.f32.mxu0 %vm1667_vm1, %v1664_v1 }
 0xc43   :  { %v1031_v9 = vpop.permute.xlu0 %1030 }
 0xca4   :  { %v1008_v10 = vpop.f32.mrb[20].mxu0 }
 0xca5   :  { %v1013_v57 = vadd.f32 %v1008_v10, %v1895_v63  ;;  %v1010_v59 = vpop.f32.mrb[21].mxu0 }
 0xca6   :  { %v1020_v62 = vadd.f32 %v1838_v56, %v1010_v59 }
 0xca7   :  { %v1309_v48 = vmul.f32 -1.442695, %v1013_v57 }
 0xca9   :  { %1547 = vpow2.f32 %v1309_v48 }
 0xcb3   :  { %v1548_v60 = vpop.eup %1547 }
 0xcb4   :  { %v1017_v61 = vadd.f32 1.0, %v1548_v60 }
 0xcb6   :  { %1549 = vrcp.f32 %v1017_v61 }
 0xcc0   :  { %v1550_v2 = vpop.eup %1549 }
 0xcc1   :  { %v1021_v3 = vmul.f32 %v1550_v2, %v1020_v62  ;;  %v1024_v8 = vsub.f32 1.0, %v1550_v2  ;;  %v1033_v63 = vmul.f32 %v1550_v2, %v1031_v9 }
 0xcc3   :  { %v1022_v5 = vadd.f32 %v1021_v3, %v938_v4 }
 0xcc5   :  { %1551 = vtanh.f32 %v1022_v5 }
 0xccf   :  { %v1552_v6 = vpop.eup %1551 }
 0xcd0   :  { %1026 = vrot.lane.b32.xlu1 %v1552_v6, %s1665_s14 }
 0xd42   :  { %v1027_v11 = vpop.permute.xlu1 %1026 }
 0xd43   :  { %v1029_v40 = vmul.f32 %v1027_v11, %v1024_v8 }
 0xd45   :  { %v1034_v41 = vadd.f32 %v1033_v63, %v1029_v40 }
 0xd47   :  { %1038 = vrot.lane.b32.xlu1 %v1034_v41, %s1665_s14 }
 0xdb9   :  { %v1039_v15 = vpop.permute.xlu1 %1038 }
 0xdba   :  { %v1041_v17 = vmul.f32 %v1039_v15, %v1036_v12 }
 0xdbc   :  { %1043 = vst.msk [vmem:[#allocation8 + $0x30] sm:$0xff] %vm150_vm0, %v1041_v17  ;;  %v1046_v18 = vadd.f32 %v1045_v16, %v1041_v17 }
 0xdbe   :  { %1140 = vrot.lane.b32.xlu1 %v1046_v18, %s1665_s14  ;;  %1310 = vmatmul.mubr.msk.f32.vlgmr.msra.gmra.mrb[8].mxu1 %vm150_vm0, %v1046_v18  ;;  %v1155_v50 = vmul.f32 %v1154_v47, %v1046_v18 }
 0xe30   :  { %v1141_v31 = vpop.permute.xlu1 %1140 }
 0xe91   :  { %v1118_v21 = vpop.f32.mrb[8].mxu1 }
 0xe92   :  { %v1123_v22 = vadd.f32 %v1118_v21, %v1901_v7  ;;  %v1120_v23 = vpop.f32.mrb[9].mxu1  ;;  %v1158_v7 = vld [vmem:[%s2044_s6 + $0x8] sm:$0xff]  ;;  %s1668_s6 = smov [#allocation8]  }
 0xe93   :  { %v1130_v27 = vadd.f32 %v1838_v56, %v1120_v23  ;;  %v1471_v56 = vpack.c.bf16 %v1158_v7, %v1157_v35  ;;  %s1253_s2 = sshll.u32 %s1668_s6, 4  ;;  %s1254_s2 = int_to_ptr.vmem [resolvable:$true] %s1253_s2 }
 0xe94   :  { %v1311_v25 = vmul.f32 -1.442695, %v1123_v22  ;;  %s1605_s13 = scalar_lea.vmem %s1254_s2, 1024  ;;  %p1610_p3 = scmp.lt.s32.totalorder %s1254_s2, %s1254_s2 }
 0xe95   :  { %1472 = vmatpush3.bf16.msra.mxu0 %v1471_v56  ;;  %p1606_p2 = scmp.ne.s32.totalorder %s1254_s2, %s1605_s13  ;;  %p1611_p4 = scmp.lt.s32.totalorder %s1605_s13, %s1605_s13 }
 0xe96   :  { %1553 = vpow2.f32 %v1311_v25  ;;  %1473 = vmatprep.subr.bf16.mxu0 %v1666_v37 }
 0xe97   :  { %p1612_p5 = por %p1611_p4, %p1610_p3 }
 0xe99   :  { %1475 = vmatpush3.bf16.msra.mxu0 %v1474_v39  ;;  %p1613_p6 = pnand %p1612_p5, %p1606_p2 }
 0xe9a   :  { %1476 = vmatprep.subr.bf16.mxu0 %v1666_v37 }
 0xe9d   :  { %1478 = vmatpush3.bf16.msra.mxu0 %v1477_v43 }
 0xe9e   :  { %1479 = vmatprep.subr.bf16.mxu0 %v1666_v37 }
 0xea0   :  { %v1554_v52 = vpop.eup %1553 }
 0xea1   :  { %v1127_v26 = vadd.f32 1.0, %v1554_v52  ;;  %1481 = vmatpush3.bf16.msra.mxu0 %v1480_v24 }
 0xea3   :  { %1555 = vrcp.f32 %v1127_v26 }
 0xead   :  { %v1556_v28 = vpop.eup %1555 }
 0xeae   :  { %v1131_v29 = vmul.f32 %v1556_v28, %v1130_v27  ;;  %v1134_v0 = vsub.f32 1.0, %v1556_v28  ;;  %v1143_v34 = vmul.f32 %v1556_v28, %v1141_v31 }
 0xeb0   :  { %v1132_v33 = vadd.f32 %v1131_v29, %v1048_v30 }
 0xeb2   :  { %1557 = vtanh.f32 %v1132_v33 }
 0xebc   :  { %v1558_v19 = vpop.eup %1557 }
 0xebd   :  { %1136 = vrot.lane.b32.xlu0 %v1558_v19, %s1665_s14 }
 0xf2f   :  { %v1137_v32 = vpop.permute.xlu0 %1136 }
 0xf30   :  { %v1139_v45 = vmul.f32 %v1137_v32, %v1134_v0 }
 0xf32   :  { %v1144_v58 = vadd.f32 %v1143_v34, %v1139_v45 }
 0xf34   :  { %1148 = vrot.lane.b32.xlu0 %v1144_v58, %s1665_s14 }
 0xfa6   :  { %v1149_v49 = vpop.permute.xlu0 %1148 }
 0xfa7   :  { %v1151_v51 = vmul.f32 %v1149_v49, %v1146_v46 }
 0xfa9   :  { %1153 = vst.msk [vmem:[#allocation8 + $0x38] sm:$0xff] %vm150_vm0, %v1151_v51  ;;  %v1156_v53 = vadd.f32 %v1155_v50, %v1151_v51 }
 0xfab   :  { %1340 = vmatmul.mubr.msk.f32.vlgmr.msra.gmra.mrb[22].mxu0 %vm150_vm0, %v1156_v53 }
 0xfac   :  { %1616 = shalt.err (!%p1613_p6)
}
 0xfad   :  { %s1617_s15 = scalar_lea.hbm %s2046_s8, 1024 }
 0xfae   :  { %p1618_p7 = scmp.ne.s32.totalorder %s2046_s8, %s1617_s15  ;;  %p1621_p8 = scmp.lt.u32.totalorder %s1617_s15, %s2046_s8 }
 0xfb0   :  { %p1623_p9 = pnand %p1621_p8, %p1618_p7 }
 0xfb2   :  { %1626 = shalt.err (!%p1623_p9)
}
 0xfb3   :  { %1259 = dma.vmem_to_hbm [thread:$0]  %s1254_s2, 1024, %s2046_s8, [#allocation5], %s1661_s3, %s1661_s3, %s1662_s10   ;;  %vm1246_vm2 = vcmask 261120  }
 0xfb4   :  { %v1312_v1 = vld [vmem:[%s2045_s7] ss:$0 sm:$0xff]  ;;  %s1669_s22 = smov [#allocation9]  }
 0xfb5   :  { %s1266_s23 = sshll.u32 %s1669_s22, 4  ;;  %s1267_s23 = int_to_ptr.vmem [resolvable:$true] %s1266_s23 }
 0xfb6   :  { %s1627_s24 = scalar_lea.vmem %s1267_s23, 128  ;;  %p1632_p11 = scmp.lt.s32.totalorder %s1267_s23, %s1267_s23 }
 0xfb7   :  { %p1628_p10 = scmp.ne.s32.totalorder %s1267_s23, %s1627_s24  ;;  %p1633_p12 = scmp.lt.s32.totalorder %s1627_s24, %s1627_s24 }
 0xfb9   :  { %p1634_p13 = por %p1633_p12, %p1632_p11 }
 0xfbb   :  { %p1635_p0 = pnand %p1634_p13, %p1628_p10 }
0x107e   :  { %v1241_v54 = vpop.f32.mrb[22].mxu0 }
0x107f   :  { %v1242_v55 = vadd.f32 %v1312_v1, %v1241_v54  ;;  %v1341_v10 = vpop.f32.mrb[23].mxu0 }
0x1081   :  { %1559 = vtanh.f32 %v1242_v55 }
0x108b   :  { %v1560_v57 = vpop.eup %1559 }
0x108c   :  { %1247 = vst.msk [vmem:[#allocation9] sm:$0xff] %vm1246_vm2, %v1560_v57 }
0x108d   :  { %1638 = shalt.err (!%p1635_p0)
}
0x108e   :  { %s1639_s7 = scalar_lea.hbm %s2047_s9, 128 }
0x108f   :  { %p1640_p1 = scmp.ne.s32.totalorder %s2047_s9, %s1639_s7  ;;  %p1643_p2 = scmp.lt.u32.totalorder %s1639_s7, %s2047_s9 }
0x1091   :  { %p1645_p3 = pnand %p1643_p2, %p1640_p1 }
0x1093   :  { %1648 = shalt.err (!%p1645_p3)
}
0x1094   :  { %1269 = dma.vmem_to_hbm [thread:$0]  %s1267_s23, 128, %s2047_s9, [#allocation10]  }
0x1095   :  { %1653 = dma.done.wait [#allocation5], 1024  }
0x1096   :  { %1654 = vsyncadd [#allocation5], 4294966272 }
0x1097   :  { %1655 = dma.done.wait [#allocation10], 128  }
0x1098   :  { %1656 = vsyncadd [#allocation10], 4294967168 }
0x1099   :  { %1276 = vsyncpa [#allocation4], 1 }
0x109a   :  { %1277 = vsyncpa [#allocation7], 1 }
0x109b   :  { %1278 = vsyncpa [#allocation5], 1 }
0x109c   :  { %1279 = vsyncpa [#allocation10], 1 }

</bundles_post_ra>
